<compile_context>
chip_gen: v7x
topology: tpu7x:2x2x1
jax: 0.10.0
libtpu: 0.0.40
codegen_flags: <defaults>
</compile_context>

<pallas_src>
import math
import functools

import jax
import jax.numpy as jnp
from jax.experimental import pallas as pl
from jax.experimental.pallas import tpu as pltpu

EPS = 1e-5


def _layernorm(x, gamma, beta):
    """LayerNorm over the last axis, f32 math (matches nn.LayerNorm, eps=1e-5)."""
    mu = jnp.mean(x, axis=-1, keepdims=True)
    var = jnp.mean(jnp.square(x - mu), axis=-1, keepdims=True)
    return (x - mu) * jax.lax.rsqrt(var + EPS) * gamma + beta


def fused_model_kernel(x_ref,
                       wqkv_ref, bqkv_ref, wo_ref, bo_ref,
                       w1_ref, b1_ref, w2_ref, b2_ref,
                       g1_ref, be1_ref, g2_ref, be2_ref,
                       wh_ref, bh_ref,
                       o_ref,
                       attn_ref,                       # VMEM scratch (B*S, E) f32
                       *, B, S, E, nhead, num_layers):
    """All encoder layers + CLS head, single invocation, weights resident in VMEM."""
    dh = E // nhead
    scale = 1.0 / math.sqrt(dh)

    x = x_ref[...]                                     # (B*S, E), f32 residual stream

    for l in range(num_layers):                        # static unroll (num_layers small)
        # ---- fused QKV projection on the whole (B*S, E) slab (bf16 MXU, f32 acc) ----
        qkv = jnp.dot(x.astype(jnp.bfloat16), wqkv_ref[l],
                      preferred_element_type=jnp.float32) + bqkv_ref[l]   # (B*S, 3E) f32

        # Split q/k/v and un-fold the batch (major-dim reshape only; lane dim untouched).
        q3 = qkv[:, 0:E].reshape(B, S, E)
        k3 = qkv[:, E:2 * E].reshape(B, S, E)
        v3 = qkv[:, 2 * E:3 * E].reshape(B, S, E)

        # ---- multi-head attention: batched over B per head, outputs written
        #      contiguously into VMEM scratch so Wo is applied exactly once ----
        for h in range(nhead):                         # static unroll
            sl = slice(h * dh, (h + 1) * dh)
            qh = q3[:, :, sl].astype(jnp.bfloat16)     # (B, S, dh)
            kh = k3[:, :, sl].astype(jnp.bfloat16)
            vh = v3[:, :, sl].astype(jnp.bfloat16)

            # scores: contract last dims directly (no explicit K transpose).
            s = jnp.einsum('bqd,bkd->bqk', qh, kh,
                           preferred_element_type=jnp.float32) * scale    # (B, S, S)
            s = s - jnp.max(s, axis=-1, keepdims=True)                    # stable softmax (f32)
            p = jnp.exp(s)
            p = p / jnp.sum(p, axis=-1, keepdims=True)

            oh = jnp.einsum('bqk,bkd->bqd', p.astype(jnp.bfloat16), vh,
                            preferred_element_type=jnp.float32)           # (B, S, dh) f32
            attn_ref[:, sl] = oh.reshape(B * S, dh)    # contiguous head output

        # Single output projection over all heads.
        attn = jnp.dot(attn_ref[...].astype(jnp.bfloat16), wo_ref[l],
                       preferred_element_type=jnp.float32) + bo_ref[l]    # (B*S, E)

        # ---- residual + post-LN (dropout == identity at eval) ----
        x = _layernorm(x + attn, g1_ref[l], be1_ref[l])

        # ---- feed-forward: Linear -> ReLU -> Linear, on the full slab ----
        h1 = jnp.maximum(
            jnp.dot(x.astype(jnp.bfloat16), w1_ref[l],
                    preferred_element_type=jnp.float32) + b1_ref[l], 0.0)  # (B*S, F)
        ff = jnp.dot(h1.astype(jnp.bfloat16), w2_ref[l],
                     preferred_element_type=jnp.float32) + b2_ref[l]       # (B*S, E)
        x = _layernorm(x + ff, g2_ref[l], be2_ref[l])

    # ---- CLS pooling + classifier head, all B logits emitted in one store ----
    cls = x.reshape(B, S, E)[:, 0, :]                                      # (B, E)
    logits = jnp.dot(cls.astype(jnp.bfloat16), wh_ref[...],
                     preferred_element_type=jnp.float32) + bh_ref[...]     # (B, C)
    o_ref[...] = logits


def transformer_with_pooling_edl(src, layer_params, head_params, *, nhead, num_layers):
    """Forward pass: src [B, S, E] -> logits [B, C]. Single fused pallas_call."""
    B, S, E = src.shape
    assert E % nhead == 0, "embedding_size must be divisible by nhead"
    C = head_params["w"].shape[1]

    x2 = src.reshape(B * S, E)                         # fold batch into rows (free in XLA)

    args = (x2,
            layer_params["wqkv"], layer_params["bqkv"],
            layer_params["wo"], layer_params["bo"],
            layer_params["w1"], layer_params["b1"],
            layer_params["w2"], layer_params["b2"],
            layer_params["g1"], layer_params["be1"],
            layer_params["g2"], layer_params["be2"],
            head_params["w"], head_params["b"])

    kernel = functools.partial(fused_model_kernel,
                               B=B, S=S, E=E, nhead=nhead, num_layers=num_layers)

    return pl.pallas_call(
        kernel,
        out_shape=jax.ShapeDtypeStruct((B, C), jnp.float32),
        # Whole arrays resident in VMEM for the single invocation (no grid, no
        # per-step double-buffering of constant weights).
        in_specs=[pl.BlockSpec(memory_space=pltpu.MemorySpace.VMEM)] * len(args),
        out_specs=pl.BlockSpec(memory_space=pltpu.MemorySpace.VMEM),
        scratch_shapes=[pltpu.VMEM((B * S, E), jnp.float32)],  # concatenated head outputs
    )(*args)


def init_params(key, E, nhead, F, num_layers, C):
    """Per-layer weights stacked along a leading layer dim; matmul weights in bf16."""
    def lin(k, fan_in, shape):
        bound = 1.0 / math.sqrt(fan_in)
        return jax.random.uniform(k, shape, jnp.float32, -bound, bound)

    ks = jax.random.split(key, 10)
    L = num_layers
    layer_params = dict(
        wqkv=lin(ks[0], E, (L, E, 3 * E)).astype(jnp.bfloat16),   # fused Wq|Wk|Wv
        bqkv=lin(ks[1], E, (L, 1, 3 * E)),
        wo=lin(ks[2], E, (L, E, E)).astype(jnp.bfloat16),
        bo=lin(ks[3], E, (L, 1, E)),
        w1=lin(ks[4], E, (L, E, F)).astype(jnp.bfloat16),
        b1=lin(ks[5], E, (L, 1, F)),
        w2=lin(ks[6], F, (L, F, E)).astype(jnp.bfloat16),
        b2=lin(ks[7], F, (L, 1, E)),
        g1=jnp.ones((L, 1, E), jnp.float32), be1=jnp.zeros((L, 1, E), jnp.float32),
        g2=jnp.ones((L, 1, E), jnp.float32), be2=jnp.zeros((L, 1, E), jnp.float32),
    )
    head_params = dict(w=lin(ks[8], E, (E, C)).astype(jnp.bfloat16),
                       b=lin(ks[9], E, (1, C)))
    return layer_params, head_params


if __name__ == "__main__":
    # Small shapes consistent with the module: src is [batch, seq, embedding].
    B, S, E = 2, 8, 32
    nhead, dim_feedforward, num_layers, num_classes = 4, 64, 2, 4

    key = jax.random.PRNGKey(0)
    src = jax.random.normal(jax.random.fold_in(key, 7), (B, S, E), jnp.float32)
    layer_params, head_params = init_params(
        key, E, nhead, dim_feedforward, num_layers, num_classes)

    logits = transformer_with_pooling_edl(
        src, layer_params, head_params, nhead=nhead, num_layers=num_layers)
    jax.block_until_ready(logits)
    assert logits.shape == (B, num_classes)
    assert bool(jnp.all(jnp.isfinite(logits)))
    print("KERNEL_OK")
</pallas_src>

<mosaic_0001>
module attributes {stable_mosaic.version = 11 : i64} {
  func.func @fused_model_kernel(%arg0: memref<16x32xf32, #tpu.memory_space<vmem>>, %arg1: memref<2x32x96xbf16, #tpu.memory_space<vmem>>, %arg2: memref<2x1x96xf32, #tpu.memory_space<vmem>>, %arg3: memref<2x32x32xbf16, #tpu.memory_space<vmem>>, %arg4: memref<2x1x32xf32, #tpu.memory_space<vmem>>, %arg5: memref<2x32x64xbf16, #tpu.memory_space<vmem>>, %arg6: memref<2x1x64xf32, #tpu.memory_space<vmem>>, %arg7: memref<2x64x32xbf16, #tpu.memory_space<vmem>>, %arg8: memref<2x1x32xf32, #tpu.memory_space<vmem>>, %arg9: memref<2x1x32xf32, #tpu.memory_space<vmem>>, %arg10: memref<2x1x32xf32, #tpu.memory_space<vmem>>, %arg11: memref<2x1x32xf32, #tpu.memory_space<vmem>>, %arg12: memref<2x1x32xf32, #tpu.memory_space<vmem>>, %arg13: memref<32x4xbf16, #tpu.memory_space<vmem>>, %arg14: memref<1x4xf32, #tpu.memory_space<vmem>>, %arg15: memref<2x4xf32, #tpu.memory_space<vmem>>, %arg16: memref<16x32xf32, #tpu.memory_space<vmem>>) attributes {dimension_semantics = [], scalar_prefetch = 0 : i64, scratch_operands = 1 : i64, tpu.core_type = #tpu.core_type<tc>} {
    %c0 = arith.constant 0 : index
    %c0_0 = arith.constant 0 : index
    %0 = vector.load %arg0[%c0, %c0_0] : memref<16x32xf32, #tpu.memory_space<vmem>>, vector<16x32xf32>
    %1 = arith.truncf %0 : vector<16x32xf32> to vector<16x32xbf16>
    %c0_1 = arith.constant 0 : index
    %c0_2 = arith.constant 0 : index
    %c0_3 = arith.constant 0 : index
    %2 = vector.load %arg1[%c0_1, %c0_2, %c0_3] : memref<2x32x96xbf16, #tpu.memory_space<vmem>>, vector<1x32x96xbf16>
    %3 = vector.shape_cast %2 : vector<1x32x96xbf16> to vector<32x96xbf16>
    %cst = arith.constant dense<0.000000e+00> : vector<16x96xf32>
    %4 = tpu.matmul %1, %3, %cst {dimension_numbers = #tpu.dot_dimension_numbers<[1], [0], [0], [1], [0, 0, 1, 1], [], []>} : vector<16x32xbf16>, vector<32x96xbf16>, vector<16x96xf32> -> vector<16x96xf32>
    %c0_4 = arith.constant 0 : index
    %c0_5 = arith.constant 0 : index
    %c0_6 = arith.constant 0 : index
    %5 = vector.load %arg2[%c0_4, %c0_5, %c0_6] : memref<2x1x96xf32, #tpu.memory_space<vmem>>, vector<1x1x96xf32>
    %6 = vector.shape_cast %5 : vector<1x1x96xf32> to vector<1x96xf32>
    %7 = vector.broadcast %6 : vector<1x96xf32> to vector<16x96xf32>
    %8 = arith.addf %4, %7 : vector<16x96xf32>
    %9 = vector.extract_strided_slice %8 {offsets = [0, 0], sizes = [16, 32], strides = [1, 1]} : vector<16x96xf32> to vector<16x32xf32>
    %10 = vector.shape_cast %9 : vector<16x32xf32> to vector<2x8x32xf32>
    %11 = vector.extract_strided_slice %8 {offsets = [0, 32], sizes = [16, 32], strides = [1, 1]} : vector<16x96xf32> to vector<16x32xf32>
    %12 = vector.shape_cast %11 : vector<16x32xf32> to vector<2x8x32xf32>
    %13 = vector.extract_strided_slice %8 {offsets = [0, 64], sizes = [16, 32], strides = [1, 1]} : vector<16x96xf32> to vector<16x32xf32>
    %14 = vector.shape_cast %13 : vector<16x32xf32> to vector<2x8x32xf32>
    %15 = vector.extract_strided_slice %10 {offsets = [0, 0, 0], sizes = [2, 8, 8], strides = [1, 1, 1]} : vector<2x8x32xf32> to vector<2x8x8xf32>
    %16 = arith.truncf %15 : vector<2x8x8xf32> to vector<2x8x8xbf16>
    %17 = vector.extract_strided_slice %12 {offsets = [0, 0, 0], sizes = [2, 8, 8], strides = [1, 1, 1]} : vector<2x8x32xf32> to vector<2x8x8xf32>
    %18 = arith.truncf %17 : vector<2x8x8xf32> to vector<2x8x8xbf16>
    %19 = vector.extract_strided_slice %14 {offsets = [0, 0, 0], sizes = [2, 8, 8], strides = [1, 1, 1]} : vector<2x8x32xf32> to vector<2x8x8xf32>
    %20 = arith.truncf %19 : vector<2x8x8xf32> to vector<2x8x8xbf16>
    "tpu.trace_start"() <{level = 10 : i32, message = "bqd,bkd->bqk"}> : () -> ()
    %cst_7 = arith.constant dense<0.000000e+00> : vector<2x8x8xf32>
    %21 = tpu.matmul %16, %18, %cst_7 {dimension_numbers = #tpu.dot_dimension_numbers<[2], [2], [1], [1], [0, 0, 0, 1, 1, 1], [0], [0]>} : vector<2x8x8xbf16>, vector<2x8x8xbf16>, vector<2x8x8xf32> -> vector<2x8x8xf32>
    "tpu.trace_stop"() : () -> ()
    %cst_8 = arith.constant 0.353553385 : f32
    %22 = vector.broadcast %cst_8 : f32 to vector<2x8x8xf32>
    %23 = arith.mulf %21, %22 : vector<2x8x8xf32>
    %cst_9 = arith.constant dense<0xFF800000> : vector<2x8xf32>
    %24 = vector.multi_reduction <maximumf>, %23, %cst_9 [2] : vector<2x8x8xf32> to vector<2x8xf32>
    %25 = vector.shape_cast %24 : vector<2x8xf32> to vector<2x8x1xf32>
    %26 = vector.broadcast %25 : vector<2x8x1xf32> to vector<2x8x8xf32>
    %27 = arith.subf %23, %26 : vector<2x8x8xf32>
    %28 = math.exp %27 : vector<2x8x8xf32>
    %cst_10 = arith.constant dense<0.000000e+00> : vector<2x8xf32>
    %29 = vector.multi_reduction <add>, %28, %cst_10 [2] : vector<2x8x8xf32> to vector<2x8xf32>
    %30 = vector.shape_cast %29 : vector<2x8xf32> to vector<2x8x1xf32>
    %31 = vector.broadcast %30 : vector<2x8x1xf32> to vector<2x8x8xf32>
    %32 = arith.divf %28, %31 : vector<2x8x8xf32>
    %33 = arith.truncf %32 : vector<2x8x8xf32> to vector<2x8x8xbf16>
    "tpu.trace_start"() <{level = 10 : i32, message = "bqk,bkd->bqd"}> : () -> ()
    %cst_11 = arith.constant dense<0.000000e+00> : vector<2x8x8xf32>
    %34 = tpu.matmul %33, %20, %cst_11 {dimension_numbers = #tpu.dot_dimension_numbers<[2], [1], [1], [2], [0, 0, 0, 1, 1, 2], [0], [0]>} : vector<2x8x8xbf16>, vector<2x8x8xbf16>, vector<2x8x8xf32> -> vector<2x8x8xf32>
    "tpu.trace_stop"() : () -> ()
    %35 = vector.shape_cast %34 : vector<2x8x8xf32> to vector<16x8xf32>
    %c0_12 = arith.constant 0 : index
    %c0_13 = arith.constant 0 : index
    %36 = vector.load %arg16[%c0_12, %c0_13] : memref<16x32xf32, #tpu.memory_space<vmem>>, vector<16x8xf32>
    tpu.vector_store %arg16[%c0_12, %c0_13], %35 {strides = array<i32>} : memref<16x32xf32, #tpu.memory_space<vmem>>, vector<16x8xf32>,
    %37 = vector.extract_strided_slice %10 {offsets = [0, 0, 8], sizes = [2, 8, 8], strides = [1, 1, 1]} : vector<2x8x32xf32> to vector<2x8x8xf32>
    %38 = arith.truncf %37 : vector<2x8x8xf32> to vector<2x8x8xbf16>
    %39 = vector.extract_strided_slice %12 {offsets = [0, 0, 8], sizes = [2, 8, 8], strides = [1, 1, 1]} : vector<2x8x32xf32> to vector<2x8x8xf32>
    %40 = arith.truncf %39 : vector<2x8x8xf32> to vector<2x8x8xbf16>
    %41 = vector.extract_strided_slice %14 {offsets = [0, 0, 8], sizes = [2, 8, 8], strides = [1, 1, 1]} : vector<2x8x32xf32> to vector<2x8x8xf32>
    %42 = arith.truncf %41 : vector<2x8x8xf32> to vector<2x8x8xbf16>
    "tpu.trace_start"() <{level = 10 : i32, message = "bqd,bkd->bqk"}> : () -> ()
    %cst_14 = arith.constant dense<0.000000e+00> : vector<2x8x8xf32>
    %43 = tpu.matmul %38, %40, %cst_14 {dimension_numbers = #tpu.dot_dimension_numbers<[2], [2], [1], [1], [0, 0, 0, 1, 1, 1], [0], [0]>} : vector<2x8x8xbf16>, vector<2x8x8xbf16>, vector<2x8x8xf32> -> vector<2x8x8xf32>
    "tpu.trace_stop"() : () -> ()
    %cst_15 = arith.constant 0.353553385 : f32
    %44 = vector.broadcast %cst_15 : f32 to vector<2x8x8xf32>
    %45 = arith.mulf %43, %44 : vector<2x8x8xf32>
    %cst_16 = arith.constant dense<0xFF800000> : vector<2x8xf32>
    %46 = vector.multi_reduction <maximumf>, %45, %cst_16 [2] : vector<2x8x8xf32> to vector<2x8xf32>
    %47 = vector.shape_cast %46 : vector<2x8xf32> to vector<2x8x1xf32>
    %48 = vector.broadcast %47 : vector<2x8x1xf32> to vector<2x8x8xf32>
    %49 = arith.subf %45, %48 : vector<2x8x8xf32>
    %50 = math.exp %49 : vector<2x8x8xf32>
    %cst_17 = arith.constant dense<0.000000e+00> : vector<2x8xf32>
    %51 = vector.multi_reduction <add>, %50, %cst_17 [2] : vector<2x8x8xf32> to vector<2x8xf32>
    %52 = vector.shape_cast %51 : vector<2x8xf32> to vector<2x8x1xf32>
    %53 = vector.broadcast %52 : vector<2x8x1xf32> to vector<2x8x8xf32>
    %54 = arith.divf %50, %53 : vector<2x8x8xf32>
    %55 = arith.truncf %54 : vector<2x8x8xf32> to vector<2x8x8xbf16>
    "tpu.trace_start"() <{level = 10 : i32, message = "bqk,bkd->bqd"}> : () -> ()
    %cst_18 = arith.constant dense<0.000000e+00> : vector<2x8x8xf32>
    %56 = tpu.matmul %55, %42, %cst_18 {dimension_numbers = #tpu.dot_dimension_numbers<[2], [1], [1], [2], [0, 0, 0, 1, 1, 2], [0], [0]>} : vector<2x8x8xbf16>, vector<2x8x8xbf16>, vector<2x8x8xf32> -> vector<2x8x8xf32>
    "tpu.trace_stop"() : () -> ()
    %57 = vector.shape_cast %56 : vector<2x8x8xf32> to vector<16x8xf32>
    %c0_19 = arith.constant 0 : index
    %c8 = arith.constant 8 : index
    %58 = vector.load %arg16[%c0_19, %c8] : memref<16x32xf32, #tpu.memory_space<vmem>>, vector<16x8xf32>
    tpu.vector_store %arg16[%c0_19, %c8], %57 {strides = array<i32>} : memref<16x32xf32, #tpu.memory_space<vmem>>, vector<16x8xf32>,
    %59 = vector.extract_strided_slice %10 {offsets = [0, 0, 16], sizes = [2, 8, 8], strides = [1, 1, 1]} : vector<2x8x32xf32> to vector<2x8x8xf32>
    %60 = arith.truncf %59 : vector<2x8x8xf32> to vector<2x8x8xbf16>
    %61 = vector.extract_strided_slice %12 {offsets = [0, 0, 16], sizes = [2, 8, 8], strides = [1, 1, 1]} : vector<2x8x32xf32> to vector<2x8x8xf32>
    %62 = arith.truncf %61 : vector<2x8x8xf32> to vector<2x8x8xbf16>
    %63 = vector.extract_strided_slice %14 {offsets = [0, 0, 16], sizes = [2, 8, 8], strides = [1, 1, 1]} : vector<2x8x32xf32> to vector<2x8x8xf32>
    %64 = arith.truncf %63 : vector<2x8x8xf32> to vector<2x8x8xbf16>
    "tpu.trace_start"() <{level = 10 : i32, message = "bqd,bkd->bqk"}> : () -> ()
    %cst_20 = arith.constant dense<0.000000e+00> : vector<2x8x8xf32>
    %65 = tpu.matmul %60, %62, %cst_20 {dimension_numbers = #tpu.dot_dimension_numbers<[2], [2], [1], [1], [0, 0, 0, 1, 1, 1], [0], [0]>} : vector<2x8x8xbf16>, vector<2x8x8xbf16>, vector<2x8x8xf32> -> vector<2x8x8xf32>
    "tpu.trace_stop"() : () -> ()
    %cst_21 = arith.constant 0.353553385 : f32
    %66 = vector.broadcast %cst_21 : f32 to vector<2x8x8xf32>
    %67 = arith.mulf %65, %66 : vector<2x8x8xf32>
    %cst_22 = arith.constant dense<0xFF800000> : vector<2x8xf32>
    %68 = vector.multi_reduction <maximumf>, %67, %cst_22 [2] : vector<2x8x8xf32> to vector<2x8xf32>
    %69 = vector.shape_cast %68 : vector<2x8xf32> to vector<2x8x1xf32>
    %70 = vector.broadcast %69 : vector<2x8x1xf32> to vector<2x8x8xf32>
    %71 = arith.subf %67, %70 : vector<2x8x8xf32>
    %72 = math.exp %71 : vector<2x8x8xf32>
    %cst_23 = arith.constant dense<0.000000e+00> : vector<2x8xf32>
    %73 = vector.multi_reduction <add>, %72, %cst_23 [2] : vector<2x8x8xf32> to vector<2x8xf32>
    %74 = vector.shape_cast %73 : vector<2x8xf32> to vector<2x8x1xf32>
    %75 = vector.broadcast %74 : vector<2x8x1xf32> to vector<2x8x8xf32>
    %76 = arith.divf %72, %75 : vector<2x8x8xf32>
    %77 = arith.truncf %76 : vector<2x8x8xf32> to vector<2x8x8xbf16>
    "tpu.trace_start"() <{level = 10 : i32, message = "bqk,bkd->bqd"}> : () -> ()
    %cst_24 = arith.constant dense<0.000000e+00> : vector<2x8x8xf32>
    %78 = tpu.matmul %77, %64, %cst_24 {dimension_numbers = #tpu.dot_dimension_numbers<[2], [1], [1], [2], [0, 0, 0, 1, 1, 2], [0], [0]>} : vector<2x8x8xbf16>, vector<2x8x8xbf16>, vector<2x8x8xf32> -> vector<2x8x8xf32>
    "tpu.trace_stop"() : () -> ()
    %79 = vector.shape_cast %78 : vector<2x8x8xf32> to vector<16x8xf32>
    %c0_25 = arith.constant 0 : index
    %c16 = arith.constant 16 : index
    %80 = vector.load %arg16[%c0_25, %c16] : memref<16x32xf32, #tpu.memory_space<vmem>>, vector<16x8xf32>
    tpu.vector_store %arg16[%c0_25, %c16], %79 {strides = array<i32>} : memref<16x32xf32, #tpu.memory_space<vmem>>, vector<16x8xf32>,
    %81 = vector.extract_strided_slice %10 {offsets = [0, 0, 24], sizes = [2, 8, 8], strides = [1, 1, 1]} : vector<2x8x32xf32> to vector<2x8x8xf32>
    %82 = arith.truncf %81 : vector<2x8x8xf32> to vector<2x8x8xbf16>
    %83 = vector.extract_strided_slice %12 {offsets = [0, 0, 24], sizes = [2, 8, 8], strides = [1, 1, 1]} : vector<2x8x32xf32> to vector<2x8x8xf32>
    %84 = arith.truncf %83 : vector<2x8x8xf32> to vector<2x8x8xbf16>
    %85 = vector.extract_strided_slice %14 {offsets = [0, 0, 24], sizes = [2, 8, 8], strides = [1, 1, 1]} : vector<2x8x32xf32> to vector<2x8x8xf32>
    %86 = arith.truncf %85 : vector<2x8x8xf32> to vector<2x8x8xbf16>
    "tpu.trace_start"() <{level = 10 : i32, message = "bqd,bkd->bqk"}> : () -> ()
    %cst_26 = arith.constant dense<0.000000e+00> : vector<2x8x8xf32>
    %87 = tpu.matmul %82, %84, %cst_26 {dimension_numbers = #tpu.dot_dimension_numbers<[2], [2], [1], [1], [0, 0, 0, 1, 1, 1], [0], [0]>} : vector<2x8x8xbf16>, vector<2x8x8xbf16>, vector<2x8x8xf32> -> vector<2x8x8xf32>
    "tpu.trace_stop"() : () -> ()
    %cst_27 = arith.constant 0.353553385 : f32
    %88 = vector.broadcast %cst_27 : f32 to vector<2x8x8xf32>
    %89 = arith.mulf %87, %88 : vector<2x8x8xf32>
    %cst_28 = arith.constant dense<0xFF800000> : vector<2x8xf32>
    %90 = vector.multi_reduction <maximumf>, %89, %cst_28 [2] : vector<2x8x8xf32> to vector<2x8xf32>
    %91 = vector.shape_cast %90 : vector<2x8xf32> to vector<2x8x1xf32>
    %92 = vector.broadcast %91 : vector<2x8x1xf32> to vector<2x8x8xf32>
    %93 = arith.subf %89, %92 : vector<2x8x8xf32>
    %94 = math.exp %93 : vector<2x8x8xf32>
    %cst_29 = arith.constant dense<0.000000e+00> : vector<2x8xf32>
    %95 = vector.multi_reduction <add>, %94, %cst_29 [2] : vector<2x8x8xf32> to vector<2x8xf32>
    %96 = vector.shape_cast %95 : vector<2x8xf32> to vector<2x8x1xf32>
    %97 = vector.broadcast %96 : vector<2x8x1xf32> to vector<2x8x8xf32>
    %98 = arith.divf %94, %97 : vector<2x8x8xf32>
    %99 = arith.truncf %98 : vector<2x8x8xf32> to vector<2x8x8xbf16>
    "tpu.trace_start"() <{level = 10 : i32, message = "bqk,bkd->bqd"}> : () -> ()
    %cst_30 = arith.constant dense<0.000000e+00> : vector<2x8x8xf32>
    %100 = tpu.matmul %99, %86, %cst_30 {dimension_numbers = #tpu.dot_dimension_numbers<[2], [1], [1], [2], [0, 0, 0, 1, 1, 2], [0], [0]>} : vector<2x8x8xbf16>, vector<2x8x8xbf16>, vector<2x8x8xf32> -> vector<2x8x8xf32>
    "tpu.trace_stop"() : () -> ()
    %101 = vector.shape_cast %100 : vector<2x8x8xf32> to vector<16x8xf32>
    %c0_31 = arith.constant 0 : index
    %c24 = arith.constant 24 : index
    %102 = vector.load %arg16[%c0_31, %c24] : memref<16x32xf32, #tpu.memory_space<vmem>>, vector<16x8xf32>
    tpu.vector_store %arg16[%c0_31, %c24], %101 {strides = array<i32>} : memref<16x32xf32, #tpu.memory_space<vmem>>, vector<16x8xf32>,
    %c0_32 = arith.constant 0 : index
    %c0_33 = arith.constant 0 : index
    %103 = vector.load %arg16[%c0_32, %c0_33] : memref<16x32xf32, #tpu.memory_space<vmem>>, vector<16x32xf32>
    %104 = arith.truncf %103 : vector<16x32xf32> to vector<16x32xbf16>
    %c0_34 = arith.constant 0 : index
    %c0_35 = arith.constant 0 : index
    %c0_36 = arith.constant 0 : index
    %105 = vector.load %arg3[%c0_34, %c0_35, %c0_36] : memref<2x32x32xbf16, #tpu.memory_space<vmem>>, vector<1x32x32xbf16>
    %106 = vector.shape_cast %105 : vector<1x32x32xbf16> to vector<32x32xbf16>
    %cst_37 = arith.constant dense<0.000000e+00> : vector<16x32xf32>
    %107 = tpu.matmul %104, %106, %cst_37 {dimension_numbers = #tpu.dot_dimension_numbers<[1], [0], [0], [1], [0, 0, 1, 1], [], []>} : vector<16x32xbf16>, vector<32x32xbf16>, vector<16x32xf32> -> vector<16x32xf32>
    %c0_38 = arith.constant 0 : index
    %c0_39 = arith.constant 0 : index
    %c0_40 = arith.constant 0 : index
    %108 = vector.load %arg4[%c0_38, %c0_39, %c0_40] : memref<2x1x32xf32, #tpu.memory_space<vmem>>, vector<1x1x32xf32>
    %109 = vector.shape_cast %108 : vector<1x1x32xf32> to vector<1x32xf32>
    %110 = vector.broadcast %109 : vector<1x32xf32> to vector<16x32xf32>
    %111 = arith.addf %107, %110 : vector<16x32xf32>
    %112 = arith.addf %0, %111 : vector<16x32xf32>
    %c0_41 = arith.constant 0 : index
    %c0_42 = arith.constant 0 : index
    %c0_43 = arith.constant 0 : index
    %113 = vector.load %arg9[%c0_41, %c0_42, %c0_43] : memref<2x1x32xf32, #tpu.memory_space<vmem>>, vector<1x1x32xf32>
    %114 = vector.shape_cast %113 : vector<1x1x32xf32> to vector<1x32xf32>
    %c0_44 = arith.constant 0 : index
    %c0_45 = arith.constant 0 : index
    %c0_46 = arith.constant 0 : index
    %115 = vector.load %arg10[%c0_44, %c0_45, %c0_46] : memref<2x1x32xf32, #tpu.memory_space<vmem>>, vector<1x1x32xf32>
    %116 = vector.shape_cast %115 : vector<1x1x32xf32> to vector<1x32xf32>
    %cst_47 = arith.constant dense<0.000000e+00> : vector<16xf32>
    %117 = vector.multi_reduction <add>, %112, %cst_47 [1] : vector<16x32xf32> to vector<16xf32>
    %118 = vector.shape_cast %117 : vector<16xf32> to vector<16x1xf32>
    %cst_48 = arith.constant 3.200000e+01 : f32
    %119 = vector.broadcast %cst_48 : f32 to vector<16x1xf32>
    %120 = arith.divf %118, %119 : vector<16x1xf32>
    %121 = vector.broadcast %120 : vector<16x1xf32> to vector<16x32xf32>
    %122 = arith.subf %112, %121 : vector<16x32xf32>
    %123 = arith.mulf %122, %122 : vector<16x32xf32>
    %cst_49 = arith.constant dense<0.000000e+00> : vector<16xf32>
    %124 = vector.multi_reduction <add>, %123, %cst_49 [1] : vector<16x32xf32> to vector<16xf32>
    %125 = vector.shape_cast %124 : vector<16xf32> to vector<16x1xf32>
    %cst_50 = arith.constant 3.200000e+01 : f32
    %126 = vector.broadcast %cst_50 : f32 to vector<16x1xf32>
    %127 = arith.divf %125, %126 : vector<16x1xf32>
    %128 = vector.broadcast %120 : vector<16x1xf32> to vector<16x32xf32>
    %129 = arith.subf %112, %128 : vector<16x32xf32>
    %cst_51 = arith.constant 9.99999974E-6 : f32
    %130 = vector.broadcast %cst_51 : f32 to vector<16x1xf32>
    %131 = arith.addf %127, %130 : vector<16x1xf32>
    %132 = math.rsqrt %131 : vector<16x1xf32>
    %133 = vector.broadcast %132 : vector<16x1xf32> to vector<16x32xf32>
    %134 = arith.mulf %129, %133 : vector<16x32xf32>
    %135 = vector.broadcast %114 : vector<1x32xf32> to vector<16x32xf32>
    %136 = arith.mulf %134, %135 : vector<16x32xf32>
    %137 = vector.broadcast %116 : vector<1x32xf32> to vector<16x32xf32>
    %138 = arith.addf %136, %137 : vector<16x32xf32>
    %139 = arith.truncf %138 : vector<16x32xf32> to vector<16x32xbf16>
    %c0_52 = arith.constant 0 : index
    %c0_53 = arith.constant 0 : index
    %c0_54 = arith.constant 0 : index
    %140 = vector.load %arg5[%c0_52, %c0_53, %c0_54] : memref<2x32x64xbf16, #tpu.memory_space<vmem>>, vector<1x32x64xbf16>
    %141 = vector.shape_cast %140 : vector<1x32x64xbf16> to vector<32x64xbf16>
    %cst_55 = arith.constant dense<0.000000e+00> : vector<16x64xf32>
    %142 = tpu.matmul %139, %141, %cst_55 {dimension_numbers = #tpu.dot_dimension_numbers<[1], [0], [0], [1], [0, 0, 1, 1], [], []>} : vector<16x32xbf16>, vector<32x64xbf16>, vector<16x64xf32> -> vector<16x64xf32>
    %c0_56 = arith.constant 0 : index
    %c0_57 = arith.constant 0 : index
    %c0_58 = arith.constant 0 : index
    %143 = vector.load %arg6[%c0_56, %c0_57, %c0_58] : memref<2x1x64xf32, #tpu.memory_space<vmem>>, vector<1x1x64xf32>
    %144 = vector.shape_cast %143 : vector<1x1x64xf32> to vector<1x64xf32>
    %145 = vector.broadcast %144 : vector<1x64xf32> to vector<16x64xf32>
    %146 = arith.addf %142, %145 : vector<16x64xf32>
    %cst_59 = arith.constant 0.000000e+00 : f32
    %147 = vector.broadcast %cst_59 : f32 to vector<16x64xf32>
    %148 = arith.maximumf %146, %147 : vector<16x64xf32>
    %149 = arith.truncf %148 : vector<16x64xf32> to vector<16x64xbf16>
    %c0_60 = arith.constant 0 : index
    %c0_61 = arith.constant 0 : index
    %c0_62 = arith.constant 0 : index
    %150 = vector.load %arg7[%c0_60, %c0_61, %c0_62] : memref<2x64x32xbf16, #tpu.memory_space<vmem>>, vector<1x64x32xbf16>
    %151 = vector.shape_cast %150 : vector<1x64x32xbf16> to vector<64x32xbf16>
    %cst_63 = arith.constant dense<0.000000e+00> : vector<16x32xf32>
    %152 = tpu.matmul %149, %151, %cst_63 {dimension_numbers = #tpu.dot_dimension_numbers<[1], [0], [0], [1], [0, 0, 1, 1], [], []>} : vector<16x64xbf16>, vector<64x32xbf16>, vector<16x32xf32> -> vector<16x32xf32>
    %c0_64 = arith.constant 0 : index
    %c0_65 = arith.constant 0 : index
    %c0_66 = arith.constant 0 : index
    %153 = vector.load %arg8[%c0_64, %c0_65, %c0_66] : memref<2x1x32xf32, #tpu.memory_space<vmem>>, vector<1x1x32xf32>
    %154 = vector.shape_cast %153 : vector<1x1x32xf32> to vector<1x32xf32>
    %155 = vector.broadcast %154 : vector<1x32xf32> to vector<16x32xf32>
    %156 = arith.addf %152, %155 : vector<16x32xf32>
    %157 = arith.addf %138, %156 : vector<16x32xf32>
    %c0_67 = arith.constant 0 : index
    %c0_68 = arith.constant 0 : index
    %c0_69 = arith.constant 0 : index
    %158 = vector.load %arg11[%c0_67, %c0_68, %c0_69] : memref<2x1x32xf32, #tpu.memory_space<vmem>>, vector<1x1x32xf32>
    %159 = vector.shape_cast %158 : vector<1x1x32xf32> to vector<1x32xf32>
    %c0_70 = arith.constant 0 : index
    %c0_71 = arith.constant 0 : index
    %c0_72 = arith.constant 0 : index
    %160 = vector.load %arg12[%c0_70, %c0_71, %c0_72] : memref<2x1x32xf32, #tpu.memory_space<vmem>>, vector<1x1x32xf32>
    %161 = vector.shape_cast %160 : vector<1x1x32xf32> to vector<1x32xf32>
    %cst_73 = arith.constant dense<0.000000e+00> : vector<16xf32>
    %162 = vector.multi_reduction <add>, %157, %cst_73 [1] : vector<16x32xf32> to vector<16xf32>
    %163 = vector.shape_cast %162 : vector<16xf32> to vector<16x1xf32>
    %cst_74 = arith.constant 3.200000e+01 : f32
    %164 = vector.broadcast %cst_74 : f32 to vector<16x1xf32>
    %165 = arith.divf %163, %164 : vector<16x1xf32>
    %166 = vector.broadcast %165 : vector<16x1xf32> to vector<16x32xf32>
    %167 = arith.subf %157, %166 : vector<16x32xf32>
    %168 = arith.mulf %167, %167 : vector<16x32xf32>
    %cst_75 = arith.constant dense<0.000000e+00> : vector<16xf32>
    %169 = vector.multi_reduction <add>, %168, %cst_75 [1] : vector<16x32xf32> to vector<16xf32>
    %170 = vector.shape_cast %169 : vector<16xf32> to vector<16x1xf32>
    %cst_76 = arith.constant 3.200000e+01 : f32
    %171 = vector.broadcast %cst_76 : f32 to vector<16x1xf32>
    %172 = arith.divf %170, %171 : vector<16x1xf32>
    %173 = vector.broadcast %165 : vector<16x1xf32> to vector<16x32xf32>
    %174 = arith.subf %157, %173 : vector<16x32xf32>
    %cst_77 = arith.constant 9.99999974E-6 : f32
    %175 = vector.broadcast %cst_77 : f32 to vector<16x1xf32>
    %176 = arith.addf %172, %175 : vector<16x1xf32>
    %177 = math.rsqrt %176 : vector<16x1xf32>
    %178 = vector.broadcast %177 : vector<16x1xf32> to vector<16x32xf32>
    %179 = arith.mulf %174, %178 : vector<16x32xf32>
    %180 = vector.broadcast %159 : vector<1x32xf32> to vector<16x32xf32>
    %181 = arith.mulf %179, %180 : vector<16x32xf32>
    %182 = vector.broadcast %161 : vector<1x32xf32> to vector<16x32xf32>
    %183 = arith.addf %181, %182 : vector<16x32xf32>
    %184 = arith.truncf %183 : vector<16x32xf32> to vector<16x32xbf16>
    %c1 = arith.constant 1 : index
    %c0_78 = arith.constant 0 : index
    %c0_79 = arith.constant 0 : index
    %185 = vector.load %arg1[%c1, %c0_78, %c0_79] : memref<2x32x96xbf16, #tpu.memory_space<vmem>>, vector<1x32x96xbf16>
    %186 = vector.shape_cast %185 : vector<1x32x96xbf16> to vector<32x96xbf16>
    %cst_80 = arith.constant dense<0.000000e+00> : vector<16x96xf32>
    %187 = tpu.matmul %184, %186, %cst_80 {dimension_numbers = #tpu.dot_dimension_numbers<[1], [0], [0], [1], [0, 0, 1, 1], [], []>} : vector<16x32xbf16>, vector<32x96xbf16>, vector<16x96xf32> -> vector<16x96xf32>
    %c1_81 = arith.constant 1 : index
    %c0_82 = arith.constant 0 : index
    %c0_83 = arith.constant 0 : index
    %188 = vector.load %arg2[%c1_81, %c0_82, %c0_83] : memref<2x1x96xf32, #tpu.memory_space<vmem>>, vector<1x1x96xf32>
    %189 = vector.shape_cast %188 : vector<1x1x96xf32> to vector<1x96xf32>
    %190 = vector.broadcast %189 : vector<1x96xf32> to vector<16x96xf32>
    %191 = arith.addf %187, %190 : vector<16x96xf32>
    %192 = vector.extract_strided_slice %191 {offsets = [0, 0], sizes = [16, 32], strides = [1, 1]} : vector<16x96xf32> to vector<16x32xf32>
    %193 = vector.shape_cast %192 : vector<16x32xf32> to vector<2x8x32xf32>
    %194 = vector.extract_strided_slice %191 {offsets = [0, 32], sizes = [16, 32], strides = [1, 1]} : vector<16x96xf32> to vector<16x32xf32>
    %195 = vector.shape_cast %194 : vector<16x32xf32> to vector<2x8x32xf32>
    %196 = vector.extract_strided_slice %191 {offsets = [0, 64], sizes = [16, 32], strides = [1, 1]} : vector<16x96xf32> to vector<16x32xf32>
    %197 = vector.shape_cast %196 : vector<16x32xf32> to vector<2x8x32xf32>
    %198 = vector.extract_strided_slice %193 {offsets = [0, 0, 0], sizes = [2, 8, 8], strides = [1, 1, 1]} : vector<2x8x32xf32> to vector<2x8x8xf32>
    %199 = arith.truncf %198 : vector<2x8x8xf32> to vector<2x8x8xbf16>
    %200 = vector.extract_strided_slice %195 {offsets = [0, 0, 0], sizes = [2, 8, 8], strides = [1, 1, 1]} : vector<2x8x32xf32> to vector<2x8x8xf32>
    %201 = arith.truncf %200 : vector<2x8x8xf32> to vector<2x8x8xbf16>
    %202 = vector.extract_strided_slice %197 {offsets = [0, 0, 0], sizes = [2, 8, 8], strides = [1, 1, 1]} : vector<2x8x32xf32> to vector<2x8x8xf32>
    %203 = arith.truncf %202 : vector<2x8x8xf32> to vector<2x8x8xbf16>
    "tpu.trace_start"() <{level = 10 : i32, message = "bqd,bkd->bqk"}> : () -> ()
    %cst_84 = arith.constant dense<0.000000e+00> : vector<2x8x8xf32>
    %204 = tpu.matmul %199, %201, %cst_84 {dimension_numbers = #tpu.dot_dimension_numbers<[2], [2], [1], [1], [0, 0, 0, 1, 1, 1], [0], [0]>} : vector<2x8x8xbf16>, vector<2x8x8xbf16>, vector<2x8x8xf32> -> vector<2x8x8xf32>
    "tpu.trace_stop"() : () -> ()
    %cst_85 = arith.constant 0.353553385 : f32
    %205 = vector.broadcast %cst_85 : f32 to vector<2x8x8xf32>
    %206 = arith.mulf %204, %205 : vector<2x8x8xf32>
    %cst_86 = arith.constant dense<0xFF800000> : vector<2x8xf32>
    %207 = vector.multi_reduction <maximumf>, %206, %cst_86 [2] : vector<2x8x8xf32> to vector<2x8xf32>
    %208 = vector.shape_cast %207 : vector<2x8xf32> to vector<2x8x1xf32>
    %209 = vector.broadcast %208 : vector<2x8x1xf32> to vector<2x8x8xf32>
    %210 = arith.subf %206, %209 : vector<2x8x8xf32>
    %211 = math.exp %210 : vector<2x8x8xf32>
    %cst_87 = arith.constant dense<0.000000e+00> : vector<2x8xf32>
    %212 = vector.multi_reduction <add>, %211, %cst_87 [2] : vector<2x8x8xf32> to vector<2x8xf32>
    %213 = vector.shape_cast %212 : vector<2x8xf32> to vector<2x8x1xf32>
    %214 = vector.broadcast %213 : vector<2x8x1xf32> to vector<2x8x8xf32>
    %215 = arith.divf %211, %214 : vector<2x8x8xf32>
    %216 = arith.truncf %215 : vector<2x8x8xf32> to vector<2x8x8xbf16>
    "tpu.trace_start"() <{level = 10 : i32, message = "bqk,bkd->bqd"}> : () -> ()
    %cst_88 = arith.constant dense<0.000000e+00> : vector<2x8x8xf32>
    %217 = tpu.matmul %216, %203, %cst_88 {dimension_numbers = #tpu.dot_dimension_numbers<[2], [1], [1], [2], [0, 0, 0, 1, 1, 2], [0], [0]>} : vector<2x8x8xbf16>, vector<2x8x8xbf16>, vector<2x8x8xf32> -> vector<2x8x8xf32>
    "tpu.trace_stop"() : () -> ()
    %218 = vector.shape_cast %217 : vector<2x8x8xf32> to vector<16x8xf32>
    %c0_89 = arith.constant 0 : index
    %c0_90 = arith.constant 0 : index
    %219 = vector.load %arg16[%c0_89, %c0_90] : memref<16x32xf32, #tpu.memory_space<vmem>>, vector<16x8xf32>
    tpu.vector_store %arg16[%c0_89, %c0_90], %218 {strides = array<i32>} : memref<16x32xf32, #tpu.memory_space<vmem>>, vector<16x8xf32>,
    %220 = vector.extract_strided_slice %193 {offsets = [0, 0, 8], sizes = [2, 8, 8], strides = [1, 1, 1]} : vector<2x8x32xf32> to vector<2x8x8xf32>
    %221 = arith.truncf %220 : vector<2x8x8xf32> to vector<2x8x8xbf16>
    %222 = vector.extract_strided_slice %195 {offsets = [0, 0, 8], sizes = [2, 8, 8], strides = [1, 1, 1]} : vector<2x8x32xf32> to vector<2x8x8xf32>
    %223 = arith.truncf %222 : vector<2x8x8xf32> to vector<2x8x8xbf16>
    %224 = vector.extract_strided_slice %197 {offsets = [0, 0, 8], sizes = [2, 8, 8], strides = [1, 1, 1]} : vector<2x8x32xf32> to vector<2x8x8xf32>
    %225 = arith.truncf %224 : vector<2x8x8xf32> to vector<2x8x8xbf16>
    "tpu.trace_start"() <{level = 10 : i32, message = "bqd,bkd->bqk"}> : () -> ()
    %cst_91 = arith.constant dense<0.000000e+00> : vector<2x8x8xf32>
    %226 = tpu.matmul %221, %223, %cst_91 {dimension_numbers = #tpu.dot_dimension_numbers<[2], [2], [1], [1], [0, 0, 0, 1, 1, 1], [0], [0]>} : vector<2x8x8xbf16>, vector<2x8x8xbf16>, vector<2x8x8xf32> -> vector<2x8x8xf32>
    "tpu.trace_stop"() : () -> ()
    %cst_92 = arith.constant 0.353553385 : f32
    %227 = vector.broadcast %cst_92 : f32 to vector<2x8x8xf32>
    %228 = arith.mulf %226, %227 : vector<2x8x8xf32>
    %cst_93 = arith.constant dense<0xFF800000> : vector<2x8xf32>
    %229 = vector.multi_reduction <maximumf>, %228, %cst_93 [2] : vector<2x8x8xf32> to vector<2x8xf32>
    %230 = vector.shape_cast %229 : vector<2x8xf32> to vector<2x8x1xf32>
    %231 = vector.broadcast %230 : vector<2x8x1xf32> to vector<2x8x8xf32>
    %232 = arith.subf %228, %231 : vector<2x8x8xf32>
    %233 = math.exp %232 : vector<2x8x8xf32>
    %cst_94 = arith.constant dense<0.000000e+00> : vector<2x8xf32>
    %234 = vector.multi_reduction <add>, %233, %cst_94 [2] : vector<2x8x8xf32> to vector<2x8xf32>
    %235 = vector.shape_cast %234 : vector<2x8xf32> to vector<2x8x1xf32>
    %236 = vector.broadcast %235 : vector<2x8x1xf32> to vector<2x8x8xf32>
    %237 = arith.divf %233, %236 : vector<2x8x8xf32>
    %238 = arith.truncf %237 : vector<2x8x8xf32> to vector<2x8x8xbf16>
    "tpu.trace_start"() <{level = 10 : i32, message = "bqk,bkd->bqd"}> : () -> ()
    %cst_95 = arith.constant dense<0.000000e+00> : vector<2x8x8xf32>
    %239 = tpu.matmul %238, %225, %cst_95 {dimension_numbers = #tpu.dot_dimension_numbers<[2], [1], [1], [2], [0, 0, 0, 1, 1, 2], [0], [0]>} : vector<2x8x8xbf16>, vector<2x8x8xbf16>, vector<2x8x8xf32> -> vector<2x8x8xf32>
    "tpu.trace_stop"() : () -> ()
    %240 = vector.shape_cast %239 : vector<2x8x8xf32> to vector<16x8xf32>
    %c0_96 = arith.constant 0 : index
    %c8_97 = arith.constant 8 : index
    %241 = vector.load %arg16[%c0_96, %c8_97] : memref<16x32xf32, #tpu.memory_space<vmem>>, vector<16x8xf32>
    tpu.vector_store %arg16[%c0_96, %c8_97], %240 {strides = array<i32>} : memref<16x32xf32, #tpu.memory_space<vmem>>, vector<16x8xf32>,
    %242 = vector.extract_strided_slice %193 {offsets = [0, 0, 16], sizes = [2, 8, 8], strides = [1, 1, 1]} : vector<2x8x32xf32> to vector<2x8x8xf32>
    %243 = arith.truncf %242 : vector<2x8x8xf32> to vector<2x8x8xbf16>
    %244 = vector.extract_strided_slice %195 {offsets = [0, 0, 16], sizes = [2, 8, 8], strides = [1, 1, 1]} : vector<2x8x32xf32> to vector<2x8x8xf32>
    %245 = arith.truncf %244 : vector<2x8x8xf32> to vector<2x8x8xbf16>
    %246 = vector.extract_strided_slice %197 {offsets = [0, 0, 16], sizes = [2, 8, 8], strides = [1, 1, 1]} : vector<2x8x32xf32> to vector<2x8x8xf32>
    %247 = arith.truncf %246 : vector<2x8x8xf32> to vector<2x8x8xbf16>
    "tpu.trace_start"() <{level = 10 : i32, message = "bqd,bkd->bqk"}> : () -> ()
    %cst_98 = arith.constant dense<0.000000e+00> : vector<2x8x8xf32>
    %248 = tpu.matmul %243, %245, %cst_98 {dimension_numbers = #tpu.dot_dimension_numbers<[2], [2], [1], [1], [0, 0, 0, 1, 1, 1], [0], [0]>} : vector<2x8x8xbf16>, vector<2x8x8xbf16>, vector<2x8x8xf32> -> vector<2x8x8xf32>
    "tpu.trace_stop"() : () -> ()
    %cst_99 = arith.constant 0.353553385 : f32
    %249 = vector.broadcast %cst_99 : f32 to vector<2x8x8xf32>
    %250 = arith.mulf %248, %249 : vector<2x8x8xf32>
    %cst_100 = arith.constant dense<0xFF800000> : vector<2x8xf32>
    %251 = vector.multi_reduction <maximumf>, %250, %cst_100 [2] : vector<2x8x8xf32> to vector<2x8xf32>
    %252 = vector.shape_cast %251 : vector<2x8xf32> to vector<2x8x1xf32>
    %253 = vector.broadcast %252 : vector<2x8x1xf32> to vector<2x8x8xf32>
    %254 = arith.subf %250, %253 : vector<2x8x8xf32>
    %255 = math.exp %254 : vector<2x8x8xf32>
    %cst_101 = arith.constant dense<0.000000e+00> : vector<2x8xf32>
    %256 = vector.multi_reduction <add>, %255, %cst_101 [2] : vector<2x8x8xf32> to vector<2x8xf32>
    %257 = vector.shape_cast %256 : vector<2x8xf32> to vector<2x8x1xf32>
    %258 = vector.broadcast %257 : vector<2x8x1xf32> to vector<2x8x8xf32>
    %259 = arith.divf %255, %258 : vector<2x8x8xf32>
    %260 = arith.truncf %259 : vector<2x8x8xf32> to vector<2x8x8xbf16>
    "tpu.trace_start"() <{level = 10 : i32, message = "bqk,bkd->bqd"}> : () -> ()
    %cst_102 = arith.constant dense<0.000000e+00> : vector<2x8x8xf32>
    %261 = tpu.matmul %260, %247, %cst_102 {dimension_numbers = #tpu.dot_dimension_numbers<[2], [1], [1], [2], [0, 0, 0, 1, 1, 2], [0], [0]>} : vector<2x8x8xbf16>, vector<2x8x8xbf16>, vector<2x8x8xf32> -> vector<2x8x8xf32>
    "tpu.trace_stop"() : () -> ()
    %262 = vector.shape_cast %261 : vector<2x8x8xf32> to vector<16x8xf32>
    %c0_103 = arith.constant 0 : index
    %c16_104 = arith.constant 16 : index
    %263 = vector.load %arg16[%c0_103, %c16_104] : memref<16x32xf32, #tpu.memory_space<vmem>>, vector<16x8xf32>
    tpu.vector_store %arg16[%c0_103, %c16_104], %262 {strides = array<i32>} : memref<16x32xf32, #tpu.memory_space<vmem>>, vector<16x8xf32>,
    %264 = vector.extract_strided_slice %193 {offsets = [0, 0, 24], sizes = [2, 8, 8], strides = [1, 1, 1]} : vector<2x8x32xf32> to vector<2x8x8xf32>
    %265 = arith.truncf %264 : vector<2x8x8xf32> to vector<2x8x8xbf16>
    %266 = vector.extract_strided_slice %195 {offsets = [0, 0, 24], sizes = [2, 8, 8], strides = [1, 1, 1]} : vector<2x8x32xf32> to vector<2x8x8xf32>
    %267 = arith.truncf %266 : vector<2x8x8xf32> to vector<2x8x8xbf16>
    %268 = vector.extract_strided_slice %197 {offsets = [0, 0, 24], sizes = [2, 8, 8], strides = [1, 1, 1]} : vector<2x8x32xf32> to vector<2x8x8xf32>
    %269 = arith.truncf %268 : vector<2x8x8xf32> to vector<2x8x8xbf16>
    "tpu.trace_start"() <{level = 10 : i32, message = "bqd,bkd->bqk"}> : () -> ()
    %cst_105 = arith.constant dense<0.000000e+00> : vector<2x8x8xf32>
    %270 = tpu.matmul %265, %267, %cst_105 {dimension_numbers = #tpu.dot_dimension_numbers<[2], [2], [1], [1], [0, 0, 0, 1, 1, 1], [0], [0]>} : vector<2x8x8xbf16>, vector<2x8x8xbf16>, vector<2x8x8xf32> -> vector<2x8x8xf32>
    "tpu.trace_stop"() : () -> ()
    %cst_106 = arith.constant 0.353553385 : f32
    %271 = vector.broadcast %cst_106 : f32 to vector<2x8x8xf32>
    %272 = arith.mulf %270, %271 : vector<2x8x8xf32>
    %cst_107 = arith.constant dense<0xFF800000> : vector<2x8xf32>
    %273 = vector.multi_reduction <maximumf>, %272, %cst_107 [2] : vector<2x8x8xf32> to vector<2x8xf32>
    %274 = vector.shape_cast %273 : vector<2x8xf32> to vector<2x8x1xf32>
    %275 = vector.broadcast %274 : vector<2x8x1xf32> to vector<2x8x8xf32>
    %276 = arith.subf %272, %275 : vector<2x8x8xf32>
    %277 = math.exp %276 : vector<2x8x8xf32>
    %cst_108 = arith.constant dense<0.000000e+00> : vector<2x8xf32>
    %278 = vector.multi_reduction <add>, %277, %cst_108 [2] : vector<2x8x8xf32> to vector<2x8xf32>
    %279 = vector.shape_cast %278 : vector<2x8xf32> to vector<2x8x1xf32>
    %280 = vector.broadcast %279 : vector<2x8x1xf32> to vector<2x8x8xf32>
    %281 = arith.divf %277, %280 : vector<2x8x8xf32>
    %282 = arith.truncf %281 : vector<2x8x8xf32> to vector<2x8x8xbf16>
    "tpu.trace_start"() <{level = 10 : i32, message = "bqk,bkd->bqd"}> : () -> ()
    %cst_109 = arith.constant dense<0.000000e+00> : vector<2x8x8xf32>
    %283 = tpu.matmul %282, %269, %cst_109 {dimension_numbers = #tpu.dot_dimension_numbers<[2], [1], [1], [2], [0, 0, 0, 1, 1, 2], [0], [0]>} : vector<2x8x8xbf16>, vector<2x8x8xbf16>, vector<2x8x8xf32> -> vector<2x8x8xf32>
    "tpu.trace_stop"() : () -> ()
    %284 = vector.shape_cast %283 : vector<2x8x8xf32> to vector<16x8xf32>
    %c0_110 = arith.constant 0 : index
    %c24_111 = arith.constant 24 : index
    %285 = vector.load %arg16[%c0_110, %c24_111] : memref<16x32xf32, #tpu.memory_space<vmem>>, vector<16x8xf32>
    tpu.vector_store %arg16[%c0_110, %c24_111], %284 {strides = array<i32>} : memref<16x32xf32, #tpu.memory_space<vmem>>, vector<16x8xf32>,
    %c0_112 = arith.constant 0 : index
    %c0_113 = arith.constant 0 : index
    %286 = vector.load %arg16[%c0_112, %c0_113] : memref<16x32xf32, #tpu.memory_space<vmem>>, vector<16x32xf32>
    %287 = arith.truncf %286 : vector<16x32xf32> to vector<16x32xbf16>
    %c1_114 = arith.constant 1 : index
    %c0_115 = arith.constant 0 : index
    %c0_116 = arith.constant 0 : index
    %288 = vector.load %arg3[%c1_114, %c0_115, %c0_116] : memref<2x32x32xbf16, #tpu.memory_space<vmem>>, vector<1x32x32xbf16>
    %289 = vector.shape_cast %288 : vector<1x32x32xbf16> to vector<32x32xbf16>
    %cst_117 = arith.constant dense<0.000000e+00> : vector<16x32xf32>
    %290 = tpu.matmul %287, %289, %cst_117 {dimension_numbers = #tpu.dot_dimension_numbers<[1], [0], [0], [1], [0, 0, 1, 1], [], []>} : vector<16x32xbf16>, vector<32x32xbf16>, vector<16x32xf32> -> vector<16x32xf32>
    %c1_118 = arith.constant 1 : index
    %c0_119 = arith.constant 0 : index
    %c0_120 = arith.constant 0 : index
    %291 = vector.load %arg4[%c1_118, %c0_119, %c0_120] : memref<2x1x32xf32, #tpu.memory_space<vmem>>, vector<1x1x32xf32>
    %292 = vector.shape_cast %291 : vector<1x1x32xf32> to vector<1x32xf32>
    %293 = vector.broadcast %292 : vector<1x32xf32> to vector<16x32xf32>
    %294 = arith.addf %290, %293 : vector<16x32xf32>
    %295 = arith.addf %183, %294 : vector<16x32xf32>
    %c1_121 = arith.constant 1 : index
    %c0_122 = arith.constant 0 : index
    %c0_123 = arith.constant 0 : index
    %296 = vector.load %arg9[%c1_121, %c0_122, %c0_123] : memref<2x1x32xf32, #tpu.memory_space<vmem>>, vector<1x1x32xf32>
    %297 = vector.shape_cast %296 : vector<1x1x32xf32> to vector<1x32xf32>
    %c1_124 = arith.constant 1 : index
    %c0_125 = arith.constant 0 : index
    %c0_126 = arith.constant 0 : index
    %298 = vector.load %arg10[%c1_124, %c0_125, %c0_126] : memref<2x1x32xf32, #tpu.memory_space<vmem>>, vector<1x1x32xf32>
    %299 = vector.shape_cast %298 : vector<1x1x32xf32> to vector<1x32xf32>
    %cst_127 = arith.constant dense<0.000000e+00> : vector<16xf32>
    %300 = vector.multi_reduction <add>, %295, %cst_127 [1] : vector<16x32xf32> to vector<16xf32>
    %301 = vector.shape_cast %300 : vector<16xf32> to vector<16x1xf32>
    %cst_128 = arith.constant 3.200000e+01 : f32
    %302 = vector.broadcast %cst_128 : f32 to vector<16x1xf32>
    %303 = arith.divf %301, %302 : vector<16x1xf32>
    %304 = vector.broadcast %303 : vector<16x1xf32> to vector<16x32xf32>
    %305 = arith.subf %295, %304 : vector<16x32xf32>
    %306 = arith.mulf %305, %305 : vector<16x32xf32>
    %cst_129 = arith.constant dense<0.000000e+00> : vector<16xf32>
    %307 = vector.multi_reduction <add>, %306, %cst_129 [1] : vector<16x32xf32> to vector<16xf32>
    %308 = vector.shape_cast %307 : vector<16xf32> to vector<16x1xf32>
    %cst_130 = arith.constant 3.200000e+01 : f32
    %309 = vector.broadcast %cst_130 : f32 to vector<16x1xf32>
    %310 = arith.divf %308, %309 : vector<16x1xf32>
    %311 = vector.broadcast %303 : vector<16x1xf32> to vector<16x32xf32>
    %312 = arith.subf %295, %311 : vector<16x32xf32>
    %cst_131 = arith.constant 9.99999974E-6 : f32
    %313 = vector.broadcast %cst_131 : f32 to vector<16x1xf32>
    %314 = arith.addf %310, %313 : vector<16x1xf32>
    %315 = math.rsqrt %314 : vector<16x1xf32>
    %316 = vector.broadcast %315 : vector<16x1xf32> to vector<16x32xf32>
    %317 = arith.mulf %312, %316 : vector<16x32xf32>
    %318 = vector.broadcast %297 : vector<1x32xf32> to vector<16x32xf32>
    %319 = arith.mulf %317, %318 : vector<16x32xf32>
    %320 = vector.broadcast %299 : vector<1x32xf32> to vector<16x32xf32>
    %321 = arith.addf %319, %320 : vector<16x32xf32>
    %322 = arith.truncf %321 : vector<16x32xf32> to vector<16x32xbf16>
    %c1_132 = arith.constant 1 : index
    %c0_133 = arith.constant 0 : index
    %c0_134 = arith.constant 0 : index
    %323 = vector.load %arg5[%c1_132, %c0_133, %c0_134] : memref<2x32x64xbf16, #tpu.memory_space<vmem>>, vector<1x32x64xbf16>
    %324 = vector.shape_cast %323 : vector<1x32x64xbf16> to vector<32x64xbf16>
    %cst_135 = arith.constant dense<0.000000e+00> : vector<16x64xf32>
    %325 = tpu.matmul %322, %324, %cst_135 {dimension_numbers = #tpu.dot_dimension_numbers<[1], [0], [0], [1], [0, 0, 1, 1], [], []>} : vector<16x32xbf16>, vector<32x64xbf16>, vector<16x64xf32> -> vector<16x64xf32>
    %c1_136 = arith.constant 1 : index
    %c0_137 = arith.constant 0 : index
    %c0_138 = arith.constant 0 : index
    %326 = vector.load %arg6[%c1_136, %c0_137, %c0_138] : memref<2x1x64xf32, #tpu.memory_space<vmem>>, vector<1x1x64xf32>
    %327 = vector.shape_cast %326 : vector<1x1x64xf32> to vector<1x64xf32>
    %328 = vector.broadcast %327 : vector<1x64xf32> to vector<16x64xf32>
    %329 = arith.addf %325, %328 : vector<16x64xf32>
    %cst_139 = arith.constant 0.000000e+00 : f32
    %330 = vector.broadcast %cst_139 : f32 to vector<16x64xf32>
    %331 = arith.maximumf %329, %330 : vector<16x64xf32>
    %332 = arith.truncf %331 : vector<16x64xf32> to vector<16x64xbf16>
    %c1_140 = arith.constant 1 : index
    %c0_141 = arith.constant 0 : index
    %c0_142 = arith.constant 0 : index
    %333 = vector.load %arg7[%c1_140, %c0_141, %c0_142] : memref<2x64x32xbf16, #tpu.memory_space<vmem>>, vector<1x64x32xbf16>
    %334 = vector.shape_cast %333 : vector<1x64x32xbf16> to vector<64x32xbf16>
    %cst_143 = arith.constant dense<0.000000e+00> : vector<16x32xf32>
    %335 = tpu.matmul %332, %334, %cst_143 {dimension_numbers = #tpu.dot_dimension_numbers<[1], [0], [0], [1], [0, 0, 1, 1], [], []>} : vector<16x64xbf16>, vector<64x32xbf16>, vector<16x32xf32> -> vector<16x32xf32>
    %c1_144 = arith.constant 1 : index
    %c0_145 = arith.constant 0 : index
    %c0_146 = arith.constant 0 : index
    %336 = vector.load %arg8[%c1_144, %c0_145, %c0_146] : memref<2x1x32xf32, #tpu.memory_space<vmem>>, vector<1x1x32xf32>
    %337 = vector.shape_cast %336 : vector<1x1x32xf32> to vector<1x32xf32>
    %338 = vector.broadcast %337 : vector<1x32xf32> to vector<16x32xf32>
    %339 = arith.addf %335, %338 : vector<16x32xf32>
    %340 = arith.addf %321, %339 : vector<16x32xf32>
    %c1_147 = arith.constant 1 : index
    %c0_148 = arith.constant 0 : index
    %c0_149 = arith.constant 0 : index
    %341 = vector.load %arg11[%c1_147, %c0_148, %c0_149] : memref<2x1x32xf32, #tpu.memory_space<vmem>>, vector<1x1x32xf32>
    %342 = vector.shape_cast %341 : vector<1x1x32xf32> to vector<1x32xf32>
    %c1_150 = arith.constant 1 : index
    %c0_151 = arith.constant 0 : index
    %c0_152 = arith.constant 0 : index
    %343 = vector.load %arg12[%c1_150, %c0_151, %c0_152] : memref<2x1x32xf32, #tpu.memory_space<vmem>>, vector<1x1x32xf32>
    %344 = vector.shape_cast %343 : vector<1x1x32xf32> to vector<1x32xf32>
    %cst_153 = arith.constant dense<0.000000e+00> : vector<16xf32>
    %345 = vector.multi_reduction <add>, %340, %cst_153 [1] : vector<16x32xf32> to vector<16xf32>
    %346 = vector.shape_cast %345 : vector<16xf32> to vector<16x1xf32>
    %cst_154 = arith.constant 3.200000e+01 : f32
    %347 = vector.broadcast %cst_154 : f32 to vector<16x1xf32>
    %348 = arith.divf %346, %347 : vector<16x1xf32>
    %349 = vector.broadcast %348 : vector<16x1xf32> to vector<16x32xf32>
    %350 = arith.subf %340, %349 : vector<16x32xf32>
    %351 = arith.mulf %350, %350 : vector<16x32xf32>
    %cst_155 = arith.constant dense<0.000000e+00> : vector<16xf32>
    %352 = vector.multi_reduction <add>, %351, %cst_155 [1] : vector<16x32xf32> to vector<16xf32>
    %353 = vector.shape_cast %352 : vector<16xf32> to vector<16x1xf32>
    %cst_156 = arith.constant 3.200000e+01 : f32
    %354 = vector.broadcast %cst_156 : f32 to vector<16x1xf32>
    %355 = arith.divf %353, %354 : vector<16x1xf32>
    %356 = vector.broadcast %348 : vector<16x1xf32> to vector<16x32xf32>
    %357 = arith.subf %340, %356 : vector<16x32xf32>
    %cst_157 = arith.constant 9.99999974E-6 : f32
    %358 = vector.broadcast %cst_157 : f32 to vector<16x1xf32>
    %359 = arith.addf %355, %358 : vector<16x1xf32>
    %360 = math.rsqrt %359 : vector<16x1xf32>
    %361 = vector.broadcast %360 : vector<16x1xf32> to vector<16x32xf32>
    %362 = arith.mulf %357, %361 : vector<16x32xf32>
    %363 = vector.broadcast %342 : vector<1x32xf32> to vector<16x32xf32>
    %364 = arith.mulf %362, %363 : vector<16x32xf32>
    %365 = vector.broadcast %344 : vector<1x32xf32> to vector<16x32xf32>
    %366 = arith.addf %364, %365 : vector<16x32xf32>
    %367 = vector.shape_cast %366 : vector<16x32xf32> to vector<2x8x32xf32>
    %368 = vector.extract_strided_slice %367 {offsets = [0, 0, 0], sizes = [2, 1, 32], strides = [1, 1, 1]} : vector<2x8x32xf32> to vector<2x1x32xf32>
    %369 = vector.shape_cast %368 : vector<2x1x32xf32> to vector<2x32xf32>
    %370 = arith.truncf %369 : vector<2x32xf32> to vector<2x32xbf16>
    %c0_158 = arith.constant 0 : index
    %c0_159 = arith.constant 0 : index
    %371 = vector.load %arg13[%c0_158, %c0_159] : memref<32x4xbf16, #tpu.memory_space<vmem>>, vector<32x4xbf16>
    %cst_160 = arith.constant dense<0.000000e+00> : vector<2x4xf32>
    %372 = tpu.matmul %370, %371, %cst_160 {dimension_numbers = #tpu.dot_dimension_numbers<[1], [0], [0], [1], [0, 0, 1, 1], [], []>} : vector<2x32xbf16>, vector<32x4xbf16>, vector<2x4xf32> -> vector<2x4xf32>
    %c0_161 = arith.constant 0 : index
    %c0_162 = arith.constant 0 : index
    %373 = vector.load %arg14[%c0_161, %c0_162] : memref<1x4xf32, #tpu.memory_space<vmem>>, vector<1x4xf32>
    %374 = vector.broadcast %373 : vector<1x4xf32> to vector<2x4xf32>
    %375 = arith.addf %372, %374 : vector<2x4xf32>
    %c0_163 = arith.constant 0 : index
    %c0_164 = arith.constant 0 : index
    %376 = vector.load %arg15[%c0_163, %c0_164] : memref<2x4xf32, #tpu.memory_space<vmem>>, vector<2x4xf32>
    tpu.vector_store %arg15[%c0_163, %c0_164], %375 {strides = array<i32>} : memref<2x4xf32, #tpu.memory_space<vmem>>, vector<2x4xf32>,
    return
  }
}

</mosaic_0001>

<bundles_post_ra>
// kernel: tpu_custom_call.1
= control target key start
LH: loop header
LB: loop body
LE: loop exit
PB: predicated region body
PF: predicated region fallthrough
CT: control target
= control target key end

     0   :  { %20 = vsyncpa [#allocation4], 0  ;;  %s4087_s0 = inlined_call_operand.hbm [shape: f32[16,32], index: 0, kind: input, shape index: {}]   ;;  %s4088_s1 = inlined_call_operand.vmem [shape: bf16[2,32,96], index: 1, kind: input, shape index: {}]   ;;  %s4089_s2 = inlined_call_operand.vmem [shape: f32[2,1,96], index: 2, kind: input, shape index: {}]   ;;  %s4090_s3 = inlined_call_operand.vmem [shape: bf16[2,32,32], index: 3, kind: input, shape index: {}]   ;;  %s4091_s4 = inlined_call_operand.vmem [shape: f32[2,1,32], index: 4, kind: input, shape index: {}]   ;;  %s4092_s5 = inlined_call_operand.vmem [shape: bf16[2,32,64], index: 5, kind: input, shape index: {}]   ;;  %s4093_s6 = inlined_call_operand.vmem [shape: f32[2,1,64], index: 6, kind: input, shape index: {}]   ;;  %s4094_s7 = inlined_call_operand.vmem [shape: bf16[2,64,32], index: 7, kind: input, shape index: {}]   ;;  %s4095_s8 = inlined_call_operand.vmem [shape: f32[2,1,32], index: 8, kind: input, shape index: {}]   ;;  %s4096_s9 = inlined_call_operand.vmem [shape: f32[2,1,32], index: 9, kind: input, shape index: {}]   ;;  %s4097_s10 = inlined_call_operand.vmem [shape: f32[2,1,32], index: 10, kind: input, shape index: {}]   ;;  %s4098_s11 = inlined_call_operand.vmem [shape: f32[2,1,32], index: 11, kind: input, shape index: {}]   ;;  %s4099_s12 = inlined_call_operand.vmem [shape: f32[2,1,32], index: 12, kind: input, shape index: {}]   ;;  %s4100_s13 = inlined_call_operand.vmem [shape: bf16[32,4], index: 13, kind: input, shape index: {}]   ;;  %s4101_s14 = inlined_call_operand.vmem [shape: f32[1,4], index: 14, kind: input, shape index: {}]   ;;  %s4102_s15 = inlined_call_operand.hbm [shape: f32[2,4], index: 15, kind: output, shape index: {}]  }
   0x1   :  { %21 = vsyncpa [#allocation5], 0  ;;  %s3433_s18 = smov [#allocation3]   ;;  %s3385_s22 = scalar_lea.hbm %s4087_s0, 256 }
   0x2   :  { %s27_s19 = sshll.u32 %s3433_s18, 4  ;;  %p3386_p0 = scmp.ne.s32.totalorder %s4087_s0, %s3385_s22  ;;  %s28_s19 = int_to_ptr.vmem [resolvable:$true] %s27_s19 }
   0x3   :  { %p3389_p1 = scmp.lt.u32.totalorder %s3385_s22, %s4087_s0 }
   0x5   :  { %p3391_p2 = pnand %p3389_p1, %p3386_p0 }
   0x7   :  { %3394 = shalt.err (!%p3391_p2)
}
   0x8   :  { %s3395_s27 = scalar_lea.vmem %s28_s19, 256  ;;  %p3400_p4 = scmp.lt.s32.totalorder %s28_s19, %s28_s19 }
   0x9   :  { %p3396_p3 = scmp.ne.s32.totalorder %s28_s19, %s3395_s27  ;;  %p3401_p5 = scmp.lt.s32.totalorder %s3395_s27, %s3395_s27 }
   0xb   :  { %p3402_p6 = por %p3401_p5, %p3400_p4 }
   0xd   :  { %p3403_p7 = pnand %p3402_p6, %p3396_p3 }
   0xf   :  { %3406 = shalt.err (!%p3403_p7)
}
  0x10   :  { %s3434_s28 = smov 128   ;;  %s4105_s29 = smov 8  }
  0x11   :  { %33 = dma.hbm_to_vmem [thread:$0]  %s4087_s0, 256, %s28_s19, [#allocation4], %s3434_s28, %s3434_s28, %s4105_s29  }
  0x12   :  { %3429 = dma.done.wait [#allocation4], 256  }
  0x13   :  { %3430 = vsyncadd [#allocation4], 4294967040  ;;  %v3436_v0 = vmov 0.0   ;;  %vm3437_vm0 = vmmov 0   ;;  %v3283_v1 = vld [vmem:[%s4088_s1] sm:$0xff]   ;;  %v3284_v2 = vld [vmem:[%s4088_s1 + $0x8] sm:$0xff]  }
  0x14   :  { %2992 = vmatprep.subr.bf16.mxu0 %v3436_v0  ;;  %2996 = vmatprep.mubr.msk.bf16.mxu0 %vm3437_vm0, %v3436_v0  ;;  %v3557_v3 = vld [vmem:[#allocation3] sm:$0xff]  ;;  %v3559_v4 = vld [vmem:[#allocation3 + $0x8] sm:$0xff]  ;;  %vm92_vm1 = vcmask 261120   ;;  %v2789_v6 = vld [vmem:[%s4089_s2] ss:$0 sm:$0xff]  ;;  %s3438_s22 = smov 96  }
  0x15   :  { %3000 = vmatprep.subr.bf16.mxu1 %v3436_v0  ;;  %3002 = vmatprep.mubr.msk.bf16.mxu1 %vm3437_vm0, %v3436_v0  ;;  %v68_v5 = vpack.c.bf16 %v3559_v4, %v3557_v3  ;;  %vm142_vm2 = vcmask 64512   ;;  %s3439_s23 = smov 64   ;;  %s3440_s24 = smov 88   ;;  %vm269_vm3 = vcmask 1043456   ;;  %vm593_vm4 = vcmask 130112  }
  0x16   :  { %2993 = vmatpush3.bf16.msra.mxu0 %v3283_v1  ;;  %s3441_s25 = smov 120   ;;  %s3442_s26 = smov 56   ;;  %vm826_vm5 = vcmask 195712   ;;  %vm1059_vm6 = vcmask 261312   ;;  %vm1289_vm7 = vcmask 523264   ;;  %vm2714_vm8 = vcmask 1041409  }
  0x17   :  { %2994 = vmatprep.subr.bf16.mxu0 %v3436_v0  ;;  %s3443_s27 = smov 80   ;;  %s3444_s28 = smov 112   ;;  %vm2772_vm9 = vcmask 25600  }
  0x18   :  { %s3445_s30 = smov 48   ;;  %s4113_s16 = smov 72  }
  0x19   :  { %s4111_s17 = smov 104   ;;  %s4109_s18 = smov 40  }
  0x1a   :  { %2995 = vmatpush3.bf16.msra.mxu0 %v3284_v2  ;;  %s4103_s0 = smov 16   ;;  %s4120_s21 = smov 24  }
  0x1b   :  { %3006 = vmatprep.subr.bf16.mxu0 %v3436_v0 }
  0x1d   :  { %2997 = vmatmul.mubr.msk.bf16.vlgmr.msra.gmra.mrb[0].mxu0 %vm92_vm1, %v68_v5 }
  0x1e   :  { %3008 = vmatprep.mubr.msk.bf16.mxu0 %vm3437_vm0, %v3436_v0 }
  0xf0   :  { %v130_v7 = vpop.f32.mrb[0].mxu0 }
  0xf1   :  { %v131_v8 = vadd.f32 %v2789_v6, %v130_v7  ;;  %v2998_v9 = vpop.f32.mrb[1].mxu0 }
  0xf2   :  { %v133_v10 = vpop.f32.mrb[2].mxu0 }
  0xf3   :  { %v3571_v11 = vpack.c.bf16 %v131_v8, %v131_v8  ;;  %v134_v12 = vadd.f32 %v2789_v6, %v133_v10  ;;  %v2999_v13 = vpop.f32.mrb[3].mxu0 }
  0xf5   :  { %140 = vrot.lane.b32.xlu0 %v3571_v11, %s3438_s22  ;;  %v3575_v14 = vpack.c.bf16 %v134_v12, %v134_v12 }
  0xf9   :  { %190 = vrot.lane.b32.xlu0 %v3575_v14, %s3438_s22 }
 0x167   :  { %v141_v15 = vpop.permute.xlu0 %140 }
 0x168   :  { %v147_v16 = vsel %vm142_vm2, %v141_v15, 0 }
 0x169   :  { %3001 = vmatpush3.bf16.xpose.msra.mxu1 %v147_v16 }
 0x16a   :  { %3012 = vmatprep.subr.bf16.mxu1 %v3436_v0 }
 0x16b   :  { %v191_v17 = vpop.permute.xlu0 %190 }
 0x16c   :  { %v196_v18 = vsel %vm142_vm2, %v191_v17, 0 }
 0x16d   :  { %3007 = vmatpush3.bf16.xpose.msra.mxu0 %v196_v18 }
 0x16e   :  { %3018 = vmatprep.subr.bf16.mxu0 %v3436_v0 }
 0x170   :  { %3003 = vmatmul.mubr.msk.bf16.vlgmr.msra.gmra.mrb[0].mxu1 %vm142_vm2, %v3571_v11 }
 0x171   :  { %3014 = vmatprep.mubr.msk.bf16.mxu1 %vm3437_vm0, %v3436_v0 }
 0x174   :  { %3009 = vmatmul.mubr.msk.bf16.vlgmr.msra.gmra.mrb[4].mxu0 %vm142_vm2, %v3575_v14 }
 0x175   :  { %3020 = vmatprep.mubr.msk.bf16.mxu0 %vm3437_vm0, %v3436_v0 }
 0x243   :  { %v183_v19 = vpop.f32.mrb[0].mxu1 }
 0x244   :  { %v238_v20 = vmul.f32 0.35355338, %v183_v19  ;;  %v3004_v21 = vpop.f32.mrb[1].mxu1 }
 0x245   :  { %v186_v22 = vpop.f32.mrb[2].mxu1 }
 0x246   :  { %v3005_v23 = vpop.f32.mrb[3].mxu1  ;;  %v240_v24 = vsel %vm142_vm2, %v238_v20, -inf }
 0x247   :  { %241 = vmax.xlane.f32.xlu1 %v240_v24  ;;  %v232_v25 = vpop.f32.mrb[4].mxu0 }
 0x248   :  { %v239_v26 = vmul.f32 0.35355338, %v232_v25  ;;  %v3010_v27 = vpop.f32.mrb[5].mxu0 }
 0x249   :  { %v235_v28 = vpop.f32.mrb[6].mxu0 }
 0x24a   :  { %v3011_v29 = vpop.f32.mrb[7].mxu0  ;;  %v243_v30 = vsel %vm142_vm2, %v239_v26, -inf }
 0x24b   :  { %244 = vmax.xlane.f32.xlu1 %v243_v30 }
 0x25c   :  { %264 = vrot.lane.b32.xlu1 %v3571_v11, %s3439_s23 }
 0x260   :  { %313 = vrot.lane.b32.xlu1 %v3575_v14, %s3439_s23 }
 0x264   :  { %365 = vrot.lane.b32.xlu1 %v3571_v11, %s3440_s24 }
 0x2d4   :  { %v242_v31 = vpop.xlane.xlu1 %241 }
 0x2d5   :  { %v246_v32 = vsub.f32 %v238_v20, %v242_v31 }
 0x2d7   :  { %v248_v33 = vmul.f32 1.442695, %v246_v32 }
 0x2d8   :  { %v245_v34 = vpop.xlane.xlu1 %244 }
 0x2d9   :  { %3305 = vpow2.f32 %v248_v33  ;;  %v247_v35 = vsub.f32 %v239_v26, %v245_v34 }
 0x2db   :  { %v250_v36 = vmul.f32 1.442695, %v247_v35 }
 0x2dc   :  { %v265_v37 = vpop.permute.xlu1 %264 }
 0x2dd   :  { %3307 = vpow2.f32 %v250_v36  ;;  %v271_v38 = vsel %vm269_vm3, %v265_v37, 0 }
 0x2de   :  { %3013 = vmatpush3.bf16.msra.mxu1 %v271_v38 }
 0x2df   :  { %3024 = vmatprep.subr.bf16.mxu1 %v3436_v0 }
 0x2e0   :  { %v314_v39 = vpop.permute.xlu1 %313 }
 0x2e1   :  { %v319_v40 = vsel %vm269_vm3, %v314_v39, 0 }
 0x2e2   :  { %3019 = vmatpush3.bf16.msra.mxu0 %v319_v40 }
 0x2e3   :  { %v3306_v41 = vpop.eup %3305  ;;  %3030 = vmatprep.subr.bf16.mxu0 %v3436_v0 }
 0x2e4   :  { %v252_v42 = vsel %vm142_vm2, %v3306_v41, 0.0  ;;  %v366_v45 = vpop.permute.xlu1 %365 }
 0x2e5   :  { %253 = vadd.xlane.f32.xlu0 %v252_v42  ;;  %v371_v52 = vsel %vm142_vm2, %v366_v45, 0 }
 0x2e7   :  { %v3308_v43 = vpop.eup %3307 }
 0x2e8   :  { %v255_v44 = vsel %vm142_vm2, %v3308_v43, 0.0 }
 0x2e9   :  { %256 = vadd.xlane.f32.xlu1 %v255_v44 }
 0x2fa   :  { %415 = vrot.lane.b32.xlu1 %v3575_v14, %s3440_s24 }
 0x2fb   :  { %363 = vrot.lane.b32.xlu0 %v3571_v11, %s3441_s25 }
 0x2fe   :  { %413 = vrot.lane.b32.xlu1 %v3575_v14, %s3441_s25 }
 0x372   :  { %v254_v46 = vpop.xlane.xlu0 %253 }
 0x373   :  { %3309 = vrcp.f32 %v254_v46 }
 0x376   :  { %v257_v47 = vpop.xlane.xlu1 %256  ;;  %v364_v57 = vpop.permute.xlu0 %363 }
 0x377   :  { %3311 = vrcp.f32 %v257_v47 }
 0x37a   :  { %v416_v54 = vpop.permute.xlu1 %415 }
 0x37b   :  { %v421_v56 = vsel %vm142_vm2, %v416_v54, 0 }
 0x37d   :  { %v3310_v48 = vpop.eup %3309 }
 0x37e   :  { %v259_v49 = vmul.f32 %v3310_v48, %v3306_v41  ;;  %v414_v58 = vpop.permute.xlu1 %413 }
 0x380   :  { %v262_v50 = vpack.c.bf16 %v259_v49, %v259_v49 }
 0x381   :  { %v3312_v51 = vpop.eup %3311 }
 0x382   :  { %3015 = vmatmul.mubr.msk.bf16.vlgmr.msra.gmra.mrb[4].mxu1 %vm142_vm2, %v262_v50  ;;  %v261_v53 = vmul.f32 %v3312_v51, %v3308_v43 }
 0x383   :  { %3025 = vmatpush3.bf16.xpose.msra.mxu1 %v371_v52  ;;  %3026 = vmatprep.mubr.msk.bf16.mxu1 %vm3437_vm0, %v3436_v0 }
 0x384   :  { %v263_v55 = vpack.c.bf16 %v261_v53, %v261_v53  ;;  %3036 = vmatprep.subr.bf16.mxu1 %v3436_v0 }
 0x386   :  { %3021 = vmatmul.mubr.msk.bf16.vlgmr.msra.gmra.mrb[8].mxu0 %vm142_vm2, %v263_v55 }
 0x387   :  { %3031 = vmatpush3.bf16.xpose.msra.mxu0 %v421_v56  ;;  %3032 = vmatprep.mubr.msk.bf16.mxu0 %vm3437_vm0, %v3436_v0 }
 0x388   :  { %3042 = vmatprep.subr.bf16.mxu0 %v3436_v0 }
 0x38a   :  { %3027 = vmatmul.mubr.msk.bf16.vlgmr.msra.gmra.mrb[8].mxu1 %vm142_vm2, %v364_v57 }
 0x38b   :  { %3038 = vmatprep.mubr.msk.bf16.mxu1 %vm3437_vm0, %v3436_v0 }
 0x38e   :  { %3033 = vmatmul.mubr.msk.bf16.vlgmr.msra.gmra.mrb[12].mxu0 %vm142_vm2, %v414_v58 }
 0x38f   :  { %3044 = vmatprep.mubr.msk.bf16.mxu0 %vm3437_vm0, %v3436_v0 }
 0x455   :  { %v307_v59 = vpop.f32.mrb[4].mxu1 }
 0x456   :  { %361 = vst.msk [vmem:[#allocation2] sm:$0xff] %vm142_vm2, %v307_v59  ;;  %v3016_v60 = vpop.f32.mrb[5].mxu1 }
 0x457   :  { %v310_v61 = vpop.f32.mrb[6].mxu1 }
 0x458   :  { %v3017_v62 = vpop.f32.mrb[7].mxu1 }
 0x459   :  { %v355_v63 = vpop.f32.mrb[8].mxu0 }
 0x45a   :  { %362 = vst.msk [vmem:[#allocation2 + $0x8] sm:$0xff] %vm142_vm2, %v355_v63  ;;  %v3022_v1 = vpop.f32.mrb[9].mxu0 }
 0x45b   :  { %v358_v2 = vpop.f32.mrb[10].mxu0 }
 0x45c   :  { %v3023_v5 = vpop.f32.mrb[11].mxu0 }
 0x45d   :  { %v407_v6 = vpop.f32.mrb[8].mxu1 }
 0x45e   :  { %v463_v7 = vmul.f32 0.35355338, %v407_v6  ;;  %v3028_v8 = vpop.f32.mrb[9].mxu1 }
 0x45f   :  { %v410_v9 = vpop.f32.mrb[10].mxu1 }
 0x460   :  { %v3029_v10 = vpop.f32.mrb[11].mxu1  ;;  %v465_v12 = vsel %vm142_vm2, %v463_v7, -inf }
 0x461   :  { %466 = vmax.xlane.f32.xlu1 %v465_v12  ;;  %v457_v13 = vpop.f32.mrb[12].mxu0 }
 0x462   :  { %v464_v15 = vmul.f32 0.35355338, %v457_v13  ;;  %v3034_v16 = vpop.f32.mrb[13].mxu0 }
 0x463   :  { %v460_v17 = vpop.f32.mrb[14].mxu0 }
 0x464   :  { %v3035_v18 = vpop.f32.mrb[15].mxu0  ;;  %v468_v19 = vsel %vm142_vm2, %v464_v15, -inf }
 0x465   :  { %469 = vmax.xlane.f32.xlu0 %v468_v19 }
 0x472   :  { %489 = vrot.lane.b32.xlu1 %v3571_v11, %s3442_s26 }
 0x476   :  { %598 = vrot.lane.b32.xlu1 %v3571_v11, %s3443_s27 }
 0x47b   :  { %537 = vrot.lane.b32.xlu0 %v3575_v14, %s3442_s26 }
 0x47f   :  { %596 = vrot.lane.b32.xlu0 %v3571_v11, %s3444_s28 }
 0x4ee   :  { %v467_v20 = vpop.xlane.xlu1 %466 }
 0x4ef   :  { %v471_v21 = vsub.f32 %v463_v7, %v467_v20 }
 0x4f1   :  { %v473_v22 = vmul.f32 1.442695, %v471_v21 }
 0x4f2   :  { %v490_v23 = vpop.permute.xlu1 %489  ;;  %v470_v24 = vpop.xlane.xlu0 %469 }
 0x4f3   :  { %3313 = vpow2.f32 %v473_v22  ;;  %v495_v25 = vsel %vm269_vm3, %v490_v23, 0  ;;  %v472_v26 = vsub.f32 %v464_v15, %v470_v24 }
 0x4f4   :  { %3037 = vmatpush3.bf16.msra.mxu1 %v495_v25 }
 0x4f5   :  { %v475_v27 = vmul.f32 1.442695, %v472_v26  ;;  %3048 = vmatprep.subr.bf16.mxu1 %v3436_v0 }
 0x4f6   :  { %v538_v28 = vpop.permute.xlu0 %537  ;;  %v599_v34 = vpop.permute.xlu1 %598 }
 0x4f7   :  { %3315 = vpow2.f32 %v475_v27  ;;  %v543_v29 = vsel %vm269_vm3, %v538_v28, 0  ;;  %v604_v41 = vsel %vm142_vm2, %v599_v34, 0 }
 0x4f8   :  { %3043 = vmatpush3.bf16.msra.mxu0 %v543_v29 }
 0x4f9   :  { %3054 = vmatprep.subr.bf16.mxu0 %v3436_v0 }
 0x4fa   :  { %v597_v46 = vpop.permute.xlu0 %596 }
 0x4fd   :  { %v3314_v30 = vpop.eup %3313 }
 0x4fe   :  { %v477_v31 = vsel %vm142_vm2, %v3314_v30, 0.0 }
 0x4ff   :  { %478 = vadd.xlane.f32.xlu1 %v477_v31 }
 0x501   :  { %v3316_v32 = vpop.eup %3315 }
 0x502   :  { %v480_v33 = vsel %vm142_vm2, %v3316_v32, 0.0 }
 0x503   :  { %481 = vadd.xlane.f32.xlu1 %v480_v33 }
 0x514   :  { %648 = vrot.lane.b32.xlu1 %v3575_v14, %s3443_s27 }
 0x518   :  { %646 = vrot.lane.b32.xlu1 %v3575_v14, %s3444_s28 }
 0x58c   :  { %v479_v35 = vpop.xlane.xlu1 %478 }
 0x58d   :  { %3317 = vrcp.f32 %v479_v35 }
 0x590   :  { %v482_v36 = vpop.xlane.xlu1 %481 }
 0x591   :  { %3319 = vrcp.f32 %v482_v36 }
 0x594   :  { %v649_v43 = vpop.permute.xlu1 %648 }
 0x595   :  { %v654_v45 = vsel %vm142_vm2, %v649_v43, 0 }
 0x597   :  { %v3318_v37 = vpop.eup %3317 }
 0x598   :  { %v484_v38 = vmul.f32 %v3318_v37, %v3314_v30  ;;  %v647_v47 = vpop.permute.xlu1 %646 }
 0x59a   :  { %v487_v39 = vpack.c.bf16 %v484_v38, %v484_v38 }
 0x59b   :  { %v3320_v40 = vpop.eup %3319 }
 0x59c   :  { %v486_v42 = vmul.f32 %v3320_v40, %v3316_v32  ;;  %3039 = vmatmul.mubr.msk.bf16.vlgmr.msra.gmra.mrb[12].mxu1 %vm142_vm2, %v487_v39 }
 0x59d   :  { %3049 = vmatpush3.bf16.xpose.msra.mxu1 %v604_v41  ;;  %3050 = vmatprep.mubr.msk.bf16.mxu1 %vm3437_vm0, %v3436_v0 }
 0x59e   :  { %v488_v44 = vpack.c.bf16 %v486_v42, %v486_v42  ;;  %3060 = vmatprep.subr.bf16.mxu1 %v3436_v0 }
 0x5a0   :  { %3045 = vmatmul.mubr.msk.bf16.vlgmr.msra.gmra.mrb[16].mxu0 %vm142_vm2, %v488_v44 }
 0x5a1   :  { %3055 = vmatpush3.bf16.xpose.msra.mxu0 %v654_v45  ;;  %3056 = vmatprep.mubr.msk.bf16.mxu0 %vm3437_vm0, %v3436_v0 }
 0x5a2   :  { %3066 = vmatprep.subr.bf16.mxu0 %v3436_v0 }
 0x5a4   :  { %3051 = vmatmul.mubr.msk.bf16.vlgmr.msra.gmra.mrb[16].mxu1 %vm142_vm2, %v597_v46 }
 0x5a5   :  { %3062 = vmatprep.mubr.msk.bf16.mxu1 %vm3437_vm0, %v3436_v0 }
 0x5a8   :  { %3057 = vmatmul.mubr.msk.bf16.vlgmr.msra.gmra.mrb[20].mxu0 %vm142_vm2, %v647_v47 }
 0x5a9   :  { %3068 = vmatprep.mubr.msk.bf16.mxu0 %vm3437_vm0, %v3436_v0 }
 0x66f   :  { %v3665_v48 = vpop.f32.mrb[12].mxu1 }
 0x670   :  { %v3040_v49 = vpop.f32.mrb[13].mxu1 }
 0x671   :  { %v534_v50 = vpop.f32.mrb[14].mxu1 }
 0x672   :  { %v3041_v51 = vpop.f32.mrb[15].mxu1 }
 0x673   :  { %v3667_v52 = vpop.f32.mrb[16].mxu0 }
 0x674   :  { %v3046_v53 = vpop.f32.mrb[17].mxu0 }
 0x675   :  { %v582_v54 = vpop.f32.mrb[18].mxu0 }
 0x676   :  { %v3047_v55 = vpop.f32.mrb[19].mxu0 }
 0x677   :  { %v640_v56 = vpop.f32.mrb[16].mxu1 }
 0x678   :  { %v696_v57 = vmul.f32 0.35355338, %v640_v56  ;;  %v3052_v58 = vpop.f32.mrb[17].mxu1 }
 0x679   :  { %v643_v59 = vpop.f32.mrb[18].mxu1 }
 0x67a   :  { %v3053_v60 = vpop.f32.mrb[19].mxu1  ;;  %v698_v61 = vsel %vm142_vm2, %v696_v57, -inf }
 0x67b   :  { %699 = vmax.xlane.f32.xlu0 %v698_v61  ;;  %v690_v62 = vpop.f32.mrb[20].mxu0 }
 0x67c   :  { %v697_v63 = vmul.f32 0.35355338, %v690_v62  ;;  %v3058_v1 = vpop.f32.mrb[21].mxu0 }
 0x67d   :  { %v693_v2 = vpop.f32.mrb[22].mxu0 }
 0x67e   :  { %v3059_v5 = vpop.f32.mrb[23].mxu0  ;;  %v701_v6 = vsel %vm142_vm2, %v697_v63, -inf }
 0x67f   :  { %702 = vmax.xlane.f32.xlu1 %v701_v6 }
 0x690   :  { %722 = vrot.lane.b32.xlu1 %v3571_v11, %s3445_s30 }
 0x694   :  { %831 = vrot.lane.b32.xlu1 %v3571_v11, %s4113_s16 }
 0x698   :  { %881 = vrot.lane.b32.xlu1 %v3575_v14, %s4113_s16 }
 0x69c   :  { %879 = vrot.lane.b32.xlu1 %v3575_v14, %s4111_s17 }
 0x708   :  { %v700_v7 = vpop.xlane.xlu0 %699 }
 0x709   :  { %v704_v8 = vsub.f32 %v696_v57, %v700_v7 }
 0x70b   :  { %v706_v9 = vmul.f32 1.442695, %v704_v8 }
 0x70c   :  { %v703_v10 = vpop.xlane.xlu1 %702 }
 0x70d   :  { %3321 = vpow2.f32 %v706_v9  ;;  %v705_v12 = vsub.f32 %v697_v63, %v703_v10 }
 0x70f   :  { %v708_v13 = vmul.f32 1.442695, %v705_v12 }
 0x710   :  { %v723_v15 = vpop.permute.xlu1 %722 }
 0x711   :  { %3323 = vpow2.f32 %v708_v13  ;;  %v728_v16 = vsel %vm269_vm3, %v723_v15, 0 }
 0x712   :  { %3061 = vmatpush3.bf16.msra.mxu1 %v728_v16 }
 0x713   :  { %3072 = vmatprep.subr.bf16.mxu1 %v3436_v0 }
 0x714   :  { %v832_v26 = vpop.permute.xlu1 %831 }
 0x715   :  { %v837_v30 = vsel %vm142_vm2, %v832_v26, 0 }
 0x717   :  { %v3322_v17 = vpop.eup %3321 }
 0x718   :  { %v710_v18 = vsel %vm142_vm2, %v3322_v17, 0.0  ;;  %v882_v32 = vpop.permute.xlu1 %881 }
 0x719   :  { %711 = vadd.xlane.f32.xlu0 %v710_v18  ;;  %v887_v34 = vsel %vm142_vm2, %v882_v32, 0 }
 0x71b   :  { %v3324_v19 = vpop.eup %3323 }
 0x71c   :  { %v713_v20 = vsel %vm142_vm2, %v3324_v19, 0.0  ;;  %v880_v36 = vpop.permute.xlu1 %879 }
 0x71d   :  { %714 = vadd.xlane.f32.xlu0 %v713_v20 }
 0x733   :  { %770 = vrot.lane.b32.xlu0 %v3575_v14, %s3445_s30 }
 0x737   :  { %829 = vrot.lane.b32.xlu0 %v3571_v11, %s4111_s17 }
 0x7a6   :  { %v712_v21 = vpop.xlane.xlu0 %711 }
 0x7a7   :  { %3325 = vrcp.f32 %v712_v21 }
 0x7aa   :  { %v715_v22 = vpop.xlane.xlu0 %714 }
 0x7ab   :  { %3327 = vrcp.f32 %v715_v22  ;;  %v3285_v22 = vld [vmem:[%s4090_s3] sm:$0xff]  }
 0x7ae   :  { %v771_v23 = vpop.permute.xlu0 %770 }
 0x7af   :  { %v776_v24 = vsel %vm269_vm3, %v771_v23, 0  ;;  %v3286_v23 = vld [vmem:[%s4090_s3 + $0x8] sm:$0xff]  }
 0x7b0   :  { %3067 = vmatpush3.bf16.msra.mxu0 %v776_v24 }
 0x7b1   :  { %v3326_v25 = vpop.eup %3325  ;;  %3078 = vmatprep.subr.bf16.mxu0 %v3436_v0 }
 0x7b2   :  { %v717_v27 = vmul.f32 %v3326_v25, %v3322_v17  ;;  %v830_v35 = vpop.permute.xlu0 %829 }
 0x7b4   :  { %v720_v28 = vpack.c.bf16 %v717_v27, %v717_v27 }
 0x7b5   :  { %v3328_v29 = vpop.eup %3327 }
 0x7b6   :  { %v719_v31 = vmul.f32 %v3328_v29, %v3324_v19  ;;  %3063 = vmatmul.mubr.msk.bf16.vlgmr.msra.gmra.mrb[20].mxu1 %vm142_vm2, %v720_v28 }
 0x7b7   :  { %3073 = vmatpush3.bf16.xpose.msra.mxu1 %v837_v30  ;;  %3074 = vmatprep.mubr.msk.bf16.mxu1 %vm3437_vm0, %v3436_v0 }
 0x7b8   :  { %v721_v33 = vpack.c.bf16 %v719_v31, %v719_v31  ;;  %3084 = vmatprep.subr.bf16.mxu1 %v3436_v0 }
 0x7ba   :  { %3069 = vmatmul.mubr.msk.bf16.vlgmr.msra.gmra.mrb[24].mxu0 %vm142_vm2, %v721_v33 }
 0x7bb   :  { %3079 = vmatpush3.bf16.xpose.msra.mxu0 %v887_v34  ;;  %3080 = vmatprep.mubr.msk.bf16.mxu0 %vm3437_vm0, %v3436_v0 }
 0x7bc   :  { %3090 = vmatprep.subr.bf16.mxu0 %v3436_v0 }
 0x7be   :  { %3075 = vmatmul.mubr.msk.bf16.vlgmr.msra.gmra.mrb[24].mxu1 %vm142_vm2, %v830_v35 }
 0x7bf   :  { %3086 = vmatprep.mubr.msk.bf16.mxu1 %vm3437_vm0, %v3436_v0 }
 0x7c2   :  { %3081 = vmatmul.mubr.msk.bf16.vlgmr.msra.gmra.mrb[28].mxu0 %vm142_vm2, %v880_v36 }
 0x7c3   :  { %3092 = vmatprep.mubr.msk.bf16.mxu0 %vm3437_vm0, %v3436_v0 }
 0x889   :  { %v764_v37 = vpop.f32.mrb[20].mxu1 }
 0x88a   :  { %v3064_v38 = vpop.f32.mrb[21].mxu1 }
 0x88b   :  { %v767_v39 = vpop.f32.mrb[22].mxu1 }
 0x88c   :  { %v3065_v40 = vpop.f32.mrb[23].mxu1 }
 0x88d   :  { %v812_v41 = vpop.f32.mrb[24].mxu0 }
 0x88e   :  { %v3070_v42 = vpop.f32.mrb[25].mxu0 }
 0x88f   :  { %v815_v43 = vpop.f32.mrb[26].mxu0 }
 0x890   :  { %v3071_v44 = vpop.f32.mrb[27].mxu0 }
 0x891   :  { %v873_v45 = vpop.f32.mrb[24].mxu1 }
 0x892   :  { %v929_v46 = vmul.f32 0.35355338, %v873_v45  ;;  %v3076_v47 = vpop.f32.mrb[25].mxu1 }
 0x893   :  { %v876_v49 = vpop.f32.mrb[26].mxu1 }
 0x894   :  { %v3077_v50 = vpop.f32.mrb[27].mxu1  ;;  %v931_v51 = vsel %vm142_vm2, %v929_v46, -inf }
 0x895   :  { %932 = vmax.xlane.f32.xlu0 %v931_v51  ;;  %v923_v53 = vpop.f32.mrb[28].mxu0 }
 0x896   :  { %v930_v54 = vmul.f32 0.35355338, %v923_v53  ;;  %v3082_v55 = vpop.f32.mrb[29].mxu0 }
 0x897   :  { %v926_v56 = vpop.f32.mrb[30].mxu0 }
 0x898   :  { %v3083_v57 = vpop.f32.mrb[31].mxu0  ;;  %v934_v58 = vsel %vm142_vm2, %v930_v54, -inf }
 0x899   :  { %935 = vmax.xlane.f32.xlu1 %v934_v58 }
 0x8aa   :  { %955 = vrot.lane.b32.xlu1 %v3571_v11, %s4109_s18 }
 0x8ae   :  { %587 = vrot.lane.b32.xlu1 %v3665_v48, %s4105_s29 }
 0x8b2   :  { %589 = vrot.lane.b32.xlu1 %v3667_v52, %s4105_s29  ;;  %s4107_s29 = smov 24  }
 0x8b6   :  { %822 = vrot.lane.b32.xlu1 %v812_v41, %s4103_s0 }
 0x922   :  { %v933_v59 = vpop.xlane.xlu0 %932 }
 0x923   :  { %v937_v60 = vsub.f32 %v929_v46, %v933_v59  ;;  %v3288_v59 = vld [vmem:[%s4092_s5 + $0x8] sm:$0xff]  }
 0x925   :  { %v939_v61 = vmul.f32 1.442695, %v937_v60  ;;  %v3289_v60 = vld [vmem:[%s4094_s7] sm:$0xff]  }
 0x926   :  { %v936_v62 = vpop.xlane.xlu1 %935 }
 0x927   :  { %3329 = vpow2.f32 %v939_v61  ;;  %v938_v63 = vsub.f32 %v930_v54, %v936_v62  ;;  %v3290_v61 = vld [vmem:[%s4094_s7 + $0x8] sm:$0xff]  }
 0x929   :  { %v941_v1 = vmul.f32 1.442695, %v938_v63 }
 0x92a   :  { %v956_v2 = vpop.permute.xlu1 %955 }
 0x92b   :  { %3331 = vpow2.f32 %v941_v1  ;;  %v961_v11 = vsel %vm269_vm3, %v956_v2, 0 }
 0x92c   :  { %3085 = vmatpush3.bf16.msra.mxu1 %v961_v11 }
 0x92d   :  { %3096 = vmatprep.subr.bf16.mxu1 %v3436_v0 }
 0x92e   :  { %v588_v48 = vpop.permute.xlu1 %587 }
 0x92f   :  { %594 = vst.msk [vmem:[#allocation2] sm:$0xff] %vm593_vm4, %v588_v48 }
 0x931   :  { %v3330_v52 = vpop.eup %3329 }
 0x932   :  { %v590_v5 = vpop.permute.xlu1 %589  ;;  %v943_v6 = vsel %vm142_vm2, %v3330_v52, 0.0 }
 0x933   :  { %595 = vst.msk [vmem:[#allocation2 + $0x8] sm:$0xff] %vm593_vm4, %v590_v5  ;;  %944 = vadd.xlane.f32.xlu0 %v943_v6  ;;  %v2813_v6 = vld [vmem:[%s4096_s9] ss:$0 sm:$0xff] }
 0x935   :  { %v3332_v7 = vpop.eup %3331 }
 0x936   :  { %v823_v8 = vpop.permute.xlu1 %822  ;;  %v946_v9 = vsel %vm142_vm2, %v3332_v7, 0.0 }
 0x937   :  { %828 = vst.msk [vmem:[#allocation2 + $0x8] sm:$0xff] %vm826_vm5, %v823_v8  ;;  %947 = vadd.xlane.f32.xlu0 %v946_v9 }
 0x94d   :  { %1003 = vrot.lane.b32.xlu0 %v3575_v14, %s4109_s18 }
 0x951   :  { %820 = vrot.lane.b32.xlu0 %v764_v37, %s4103_s0  ;;  %v2809_v37 = vld [vmem:[%s4091_s4] ss:$0 sm:$0xff] }
 0x9c0   :  { %v945_v10 = vpop.xlane.xlu0 %944 }
 0x9c1   :  { %3333 = vrcp.f32 %v945_v10  ;;  %v2814_v10 = vld [vmem:[%s4097_s10] ss:$0 sm:$0xff] }
 0x9c4   :  { %v948_v12 = vpop.xlane.xlu0 %947 }
 0x9c5   :  { %3335 = vrcp.f32 %v948_v12 }
 0x9c8   :  { %v1004_v13 = vpop.permute.xlu0 %1003 }
 0x9c9   :  { %v1009_v15 = vsel %vm269_vm3, %v1004_v13, 0 }
 0x9ca   :  { %3091 = vmatpush3.bf16.msra.mxu0 %v1009_v15 }
 0x9cb   :  { %v3334_v16 = vpop.eup %3333  ;;  %3104 = vmatprep.subr.bf16.mxu0 %v3436_v0 }
 0x9cc   :  { %v950_v17 = vmul.f32 %v3334_v16, %v3330_v52  ;;  %v821_v18 = vpop.permute.xlu0 %820 }
 0x9cd   :  { %827 = vst.msk [vmem:[#allocation2] sm:$0xff] %vm826_vm5, %v821_v18  ;;  %v3292_v18 = vld [vmem:[%s4094_s7 + $0x18] sm:$0xff]  }
 0x9ce   :  { %v953_v19 = vpack.c.bf16 %v950_v17, %v950_v17  ;;  %v3291_v17 = vld [vmem:[%s4094_s7 + $0x10] sm:$0xff]  }
 0x9cf   :  { %v3336_v20 = vpop.eup %3335 }
 0x9d0   :  { %v952_v14 = vmul.f32 %v3336_v20, %v3332_v7  ;;  %3087 = vmatmul.mubr.msk.bf16.vlgmr.msra.gmra.mrb[28].mxu1 %vm142_vm2, %v953_v19  ;;  %v2815_v19 = vld [vmem:[%s4093_s6] ss:$0 sm:$0xff] }
 0x9d1   :  { %3100 = vmatprep.mubr.msk.bf16.mxu1 %vm3437_vm0, %v3436_v0  ;;  %3097 = vmatpush3.bf16.msra.mxu1 %v3285_v22 }
 0x9d2   :  { %v954_v21 = vpack.c.bf16 %v952_v14, %v952_v14  ;;  %3098 = vmatprep.subr.bf16.mxu1 %v3436_v0 }
 0x9d4   :  { %3093 = vmatmul.mubr.msk.bf16.vlgmr.msra.gmra.mrb[32].mxu0 %vm142_vm2, %v954_v21 }
 0x9d5   :  { %3108 = vmatprep.mubr.msk.bf16.mxu0 %vm3437_vm0, %v3436_v0  ;;  %3099 = vmatpush3.bf16.msra.mxu1 %v3286_v23 }
 0x9d6   :  { %3112 = vmatprep.subr.bf16.mxu1 %v3436_v0 }
 0xaa3   :  { %v997_v24 = vpop.f32.mrb[28].mxu1 }
 0xaa4   :  { %1053 = vrot.lane.b32.xlu0 %v997_v24, %s4107_s29  ;;  %v3088_v25 = vpop.f32.mrb[29].mxu1 }
 0xaa5   :  { %v1000_v26 = vpop.f32.mrb[30].mxu1 }
 0xaa6   :  { %v3089_v27 = vpop.f32.mrb[31].mxu1 }
 0xaa7   :  { %v1045_v28 = vpop.f32.mrb[32].mxu0 }
 0xaa8   :  { %1055 = vrot.lane.b32.xlu1 %v1045_v28, %s4107_s29  ;;  %v3094_v29 = vpop.f32.mrb[33].mxu0  ;;  %v2819_v28 = vld [vmem:[%s4095_s8] ss:$0 sm:$0xff] }
 0xaa9   :  { %v1048_v30 = vpop.f32.mrb[34].mxu0 }
 0xaaa   :  { %v3095_v31 = vpop.f32.mrb[35].mxu0 }
 0xb16   :  { %v1054_v32 = vpop.permute.xlu0 %1053 }
 0xb17   :  { %1060 = vst.msk [vmem:[#allocation2] sm:$0xff] %vm1059_vm6, %v1054_v32 }
 0xb1a   :  { %v1056_v33 = vpop.permute.xlu1 %1055 }
 0xb1b   :  { %1061 = vst.msk [vmem:[#allocation2 + $0x8] sm:$0xff] %vm1059_vm6, %v1056_v33 }
 0xb1e   :  { %v1062_v34 = vld [vmem:[#allocation2] sm:$0xff] }
 0xb22   :  { %v1063_v35 = vld [vmem:[#allocation2 + $0x8] sm:$0xff] }
 0xb23   :  { %v1064_v36 = vpack.c.bf16 %v1063_v35, %v1062_v34 }
 0xb25   :  { %3101 = vmatmul.mubr.msk.bf16.vlgmr.msra.gmra.mrb[32].mxu1 %vm92_vm1, %v1064_v36 }
 0xb26   :  { %3120 = vmatprep.mubr.msk.bf16.mxu1 %vm3437_vm0, %v3436_v0  ;;  %3113 = vmatpush3.bf16.msra.mxu1 %v3289_v60 }
 0xb27   :  { %3114 = vmatprep.subr.bf16.mxu1 %v3436_v0 }
 0xb2a   :  { %3115 = vmatpush3.bf16.msra.mxu1 %v3290_v61 }
 0xb2b   :  { %3116 = vmatprep.subr.bf16.mxu1 %v3436_v0 }
 0xb2e   :  { %3117 = vmatpush3.bf16.msra.mxu1 %v3291_v17 }
 0xb2f   :  { %3118 = vmatprep.subr.bf16.mxu1 %v3436_v0 }
 0xb32   :  { %3119 = vmatpush3.bf16.msra.mxu1 %v3292_v18 }
 0xb33   :  { %3138 = vmatprep.subr.bf16.mxu1 %v3436_v0 }
 0xbf8   :  { %v1125_v38 = vpop.f32.mrb[32].mxu1 }
 0xbf9   :  { %v1126_v39 = vadd.f32 %v2809_v37, %v1125_v38  ;;  %v3102_v40 = vpop.f32.mrb[33].mxu1 }
 0xbfa   :  { %v1128_v41 = vpop.f32.mrb[34].mxu1 }
 0xbfb   :  { %v1129_v42 = vadd.f32 %v2809_v37, %v1128_v41  ;;  %v3103_v43 = vpop.f32.mrb[35].mxu1  ;;  %v1132_v44 = vadd.f32 %v1126_v39, %v3557_v3 }
 0xbfd   :  { %v1136_v45 = vsel %vm92_vm1, %v1132_v44, 0.0  ;;  %v1133_v46 = vadd.f32 %v1129_v42, %v3559_v4  ;;  %v3287_v4 = vld [vmem:[%s4092_s5] sm:$0xff]  }
 0xbfe   :  { %1137 = vadd.xlane.f32.xlu0 %v1136_v45  ;;  %3105 = vmatpush3.bf16.msra.mxu0 %v3287_v4  ;;  %v2825_v4 = vld [vmem:[%s4098_s11] ss:$0 sm:$0xff] }
 0xbff   :  { %v1139_v47 = vsel %vm92_vm1, %v1133_v46, 0.0  ;;  %3106 = vmatprep.subr.bf16.mxu0 %v3436_v0 }
 0xc00   :  { %1140 = vadd.xlane.f32.xlu1 %v1139_v47 }
 0xc02   :  { %3107 = vmatpush3.bf16.msra.mxu0 %v3288_v59 }
 0xc03   :  { %3124 = vmatprep.subr.bf16.mxu0 %v3436_v0 }
 0xc8b   :  { %v1138_v49 = vpop.xlane.xlu0 %1137 }
 0xc8c   :  { %v1143_v50 = vmul.f32 0.03125, %v1138_v49 }
 0xc8d   :  { %v1141_v51 = vpop.xlane.xlu1 %1140 }
 0xc8e   :  { %v1145_v53 = vsub.f32 %v1132_v44, %v1143_v50  ;;  %v1144_v54 = vmul.f32 0.03125, %v1141_v51  ;;  %v3293_v50 = vld [vmem:[%s4088_s1 + $0x10] sm:$0xff]   ;;  %v3294_v51 = vld [vmem:[%s4088_s1 + $0x18] sm:$0xff]  }
 0xc90   :  { %v1146_v55 = vsub.f32 %v1133_v46, %v1144_v54  ;;  %v1147_v56 = vmul.f32 %v1145_v53, %v1145_v53 }
 0xc92   :  { %v1149_v57 = vsel %vm92_vm1, %v1147_v56, 0.0  ;;  %v1148_v58 = vmul.f32 %v1146_v55, %v1146_v55 }
 0xc93   :  { %1150 = vadd.xlane.f32.xlu0 %v1149_v57 }
 0xc94   :  { %v1152_v3 = vsel %vm92_vm1, %v1148_v58, 0.0 }
 0xc97   :  { %1153 = vadd.xlane.f32.xlu0 %v1152_v3 }
 0xd20   :  { %v1151_v62 = vpop.xlane.xlu0 %1150 }
 0xd21   :  { %v1155_v63 = vmul.f32 0.03125, %v1151_v62 }
 0xd23   :  { %v1157_v1 = vadd.f32 1e-05, %v1155_v63  ;;  %v2826_v63 = vld [vmem:[%s4099_s12] ss:$0 sm:$0xff] }
 0xd24   :  { %v1154_v2 = vpop.xlane.xlu0 %1153 }
 0xd25   :  { %3337 = vrsqrt.f32 %v1157_v1  ;;  %v1156_v11 = vmul.f32 0.03125, %v1154_v2 }
 0xd27   :  { %v1158_v48 = vadd.f32 1e-05, %v1156_v11 }
 0xd29   :  { %3339 = vrsqrt.f32 %v1158_v48 }
 0xd2f   :  { %v3338_v52 = vpop.eup %3337 }
 0xd30   :  { %v1161_v5 = vmul.f32 %v3338_v52, %v1145_v53  ;;  %v2832_v52 = vld [vmem:[%s4089_s2 + $0x1] ss:$0 sm:$0xff]  ;;  %s4115_s2 = smov 72  }
 0xd32   :  { %v1169_v8 = vmul.f32 %v2813_v6, %v1161_v5 }
 0xd33   :  { %v3340_v7 = vpop.eup %3339 }
 0xd34   :  { %v1162_v9 = vmul.f32 %v3340_v7, %v1146_v55  ;;  %v1177_v13 = vadd.f32 %v2814_v10, %v1169_v8 }
 0xd36   :  { %v1170_v12 = vmul.f32 %v2813_v6, %v1162_v9 }
 0xd38   :  { %v1178_v15 = vadd.f32 %v2814_v10, %v1170_v12 }
 0xd3a   :  { %v1179_v16 = vpack.c.bf16 %v1178_v15, %v1177_v13 }
 0xd3c   :  { %3109 = vmatmul.mubr.msk.bf16.vlgmr.msra.gmra.mrb[36].mxu0 %vm92_vm1, %v1179_v16 }
 0xd3d   :  { %3128 = vmatprep.mubr.msk.bf16.mxu0 %vm3437_vm0, %v3436_v0  ;;  %3125 = vmatpush3.bf16.msra.mxu0 %v3293_v50 }
 0xd3e   :  { %3126 = vmatprep.subr.bf16.mxu0 %v3436_v0 }
 0xd41   :  { %3127 = vmatpush3.bf16.msra.mxu0 %v3294_v51 }
 0xd42   :  { %3132 = vmatprep.subr.bf16.mxu0 %v3436_v0 }
 0xe0f   :  { %v1240_v20 = vpop.f32.mrb[36].mxu0 }
 0xe10   :  { %v1241_v14 = vadd.f32 %v2815_v19, %v1240_v20  ;;  %v3110_v21 = vpop.f32.mrb[37].mxu0 }
 0xe11   :  { %v1243_v22 = vpop.f32.mrb[38].mxu0 }
 0xe12   :  { %v1244_v23 = vadd.f32 %v2815_v19, %v1243_v22  ;;  %v3111_v24 = vpop.f32.mrb[39].mxu0  ;;  %v1247_v25 = vmax.f32 %v1241_v14, 0.0 }
 0xe14   :  { %v1248_v26 = vmax.f32 %v1244_v23, 0.0 }
 0xe16   :  { %v1249_v27 = vpack.c.bf16 %v1248_v26, %v1247_v25 }
 0xe18   :  { %3121 = vmatmul.mubr.msk.bf16.vlgmr.msra.gmra.mrb[36].mxu1 %vm1289_vm7, %v1249_v27 }
 0xe19   :  { %3140 = vmatprep.mubr.msk.bf16.mxu1 %vm3437_vm0, %v3436_v0 }
 0xeeb   :  { %v1327_v29 = vpop.f32.mrb[36].mxu1 }
 0xeec   :  { %v1328_v30 = vadd.f32 %v2819_v28, %v1327_v29  ;;  %v3122_v31 = vpop.f32.mrb[37].mxu1 }
 0xeed   :  { %v1330_v32 = vpop.f32.mrb[38].mxu1 }
 0xeee   :  { %v1331_v33 = vadd.f32 %v2819_v28, %v1330_v32  ;;  %v3123_v34 = vpop.f32.mrb[39].mxu1  ;;  %v1334_v35 = vadd.f32 %v1328_v30, %v1177_v13 }
 0xef0   :  { %v1338_v36 = vsel %vm92_vm1, %v1334_v35, 0.0  ;;  %v1335_v37 = vadd.f32 %v1331_v33, %v1178_v15 }
 0xef1   :  { %1339 = vadd.xlane.f32.xlu1 %v1338_v36 }
 0xef2   :  { %v1341_v38 = vsel %vm92_vm1, %v1335_v37, 0.0 }
 0xef3   :  { %1342 = vadd.xlane.f32.xlu0 %v1341_v38 }
 0xf7e   :  { %v1340_v39 = vpop.xlane.xlu1 %1339 }
 0xf7f   :  { %v1344_v40 = vmul.f32 0.03125, %v1340_v39 }
 0xf80   :  { %v1343_v41 = vpop.xlane.xlu0 %1342 }
 0xf81   :  { %v1346_v42 = vsub.f32 %v1334_v35, %v1344_v40  ;;  %v1345_v43 = vmul.f32 0.03125, %v1343_v41 }
 0xf83   :  { %v1347_v44 = vsub.f32 %v1335_v37, %v1345_v43  ;;  %v1348_v45 = vmul.f32 %v1346_v42, %v1346_v42 }
 0xf85   :  { %v1350_v46 = vsel %vm92_vm1, %v1348_v45, 0.0  ;;  %v1349_v47 = vmul.f32 %v1347_v44, %v1347_v44 }
 0xf86   :  { %1351 = vadd.xlane.f32.xlu1 %v1350_v46 }
 0xf87   :  { %v1353_v49 = vsel %vm92_vm1, %v1349_v47, 0.0 }
 0xf88   :  { %1354 = vadd.xlane.f32.xlu0 %v1353_v49 }
0x1013   :  { %v1352_v53 = vpop.xlane.xlu1 %1351 }
0x1014   :  { %v1356_v54 = vmul.f32 0.03125, %v1352_v53 }
0x1015   :  { %v1355_v55 = vpop.xlane.xlu0 %1354 }
0x1016   :  { %v1358_v56 = vadd.f32 1e-05, %v1356_v54  ;;  %v1357_v57 = vmul.f32 0.03125, %v1355_v55 }
0x1018   :  { %3341 = vrsqrt.f32 %v1358_v56  ;;  %v1359_v58 = vadd.f32 1e-05, %v1357_v57 }
0x101a   :  { %3343 = vrsqrt.f32 %v1359_v58 }
0x1022   :  { %v3342_v3 = vpop.eup %3341 }
0x1023   :  { %v1362_v59 = vmul.f32 %v3342_v3, %v1346_v42 }
0x1024   :  { %v3344_v60 = vpop.eup %3343 }
0x1025   :  { %v1370_v61 = vmul.f32 %v2825_v4, %v1362_v59  ;;  %v1363_v62 = vmul.f32 %v3344_v60, %v1347_v44 }
0x1027   :  { %v1371_v1 = vmul.f32 %v2825_v4, %v1363_v62  ;;  %v3817_v2 = vadd.f32 %v2826_v63, %v1370_v61 }
0x1029   :  { %v3819_v11 = vadd.f32 %v2826_v63, %v1371_v1 }
0x102b   :  { %v1380_v48 = vpack.c.bf16 %v3819_v11, %v3817_v2 }
0x102d   :  { %3129 = vmatmul.mubr.msk.bf16.vlgmr.msra.gmra.mrb[40].mxu0 %vm92_vm1, %v1380_v48 }
0x102e   :  { %3134 = vmatprep.mubr.msk.bf16.mxu0 %vm3437_vm0, %v3436_v0 }
0x1100   :  { %v1443_v5 = vpop.f32.mrb[40].mxu0 }
0x1101   :  { %v1444_v6 = vadd.f32 %v2832_v52, %v1443_v5  ;;  %v3130_v7 = vpop.f32.mrb[41].mxu0 }
0x1102   :  { %v1446_v8 = vpop.f32.mrb[42].mxu0 }
0x1103   :  { %v3829_v9 = vpack.c.bf16 %v1444_v6, %v1444_v6  ;;  %v1447_v10 = vadd.f32 %v2832_v52, %v1446_v8  ;;  %v3131_v12 = vpop.f32.mrb[43].mxu0 }
0x1105   :  { %v3831_v13 = vpack.c.bf16 %v1447_v10, %v1447_v10  ;;  %1453 = vrot.lane.b32.xlu1 %v3829_v9, %s3438_s22 }
0x1107   :  { %1502 = vrot.lane.b32.xlu0 %v3831_v13, %s3438_s22  ;;  %s4116_s22 = smov 104  }
0x1177   :  { %v1454_v15 = vpop.permute.xlu1 %1453 }
0x1178   :  { %v1459_v16 = vsel %vm142_vm2, %v1454_v15, 0 }
0x1179   :  { %3133 = vmatpush3.bf16.xpose.msra.mxu0 %v1459_v16  ;;  %v1503_v17 = vpop.permute.xlu0 %1502 }
0x117a   :  { %v1508_v18 = vsel %vm142_vm2, %v1503_v17, 0  ;;  %3144 = vmatprep.subr.bf16.mxu0 %v3436_v0 }
0x117b   :  { %3139 = vmatpush3.bf16.xpose.msra.mxu1 %v1508_v18 }
0x117c   :  { %3150 = vmatprep.subr.bf16.mxu1 %v3436_v0 }
0x1180   :  { %3135 = vmatmul.mubr.msk.bf16.vlgmr.msra.gmra.mrb[44].mxu0 %vm142_vm2, %v3829_v9 }
0x1181   :  { %3146 = vmatprep.mubr.msk.bf16.mxu0 %vm3437_vm0, %v3436_v0 }
0x1182   :  { %3141 = vmatmul.mubr.msk.bf16.vlgmr.msra.gmra.mrb[40].mxu1 %vm142_vm2, %v3831_v13 }
0x1183   :  { %3152 = vmatprep.mubr.msk.bf16.mxu1 %vm3437_vm0, %v3436_v0 }
0x1253   :  { %v1495_v19 = vpop.f32.mrb[44].mxu0 }
0x1254   :  { %v1550_v20 = vmul.f32 0.35355338, %v1495_v19  ;;  %v3136_v14 = vpop.f32.mrb[45].mxu0 }
0x1255   :  { %v1498_v21 = vpop.f32.mrb[46].mxu0  ;;  %v1544_v22 = vpop.f32.mrb[40].mxu1 }
0x1256   :  { %v1551_v23 = vmul.f32 0.35355338, %v1544_v22  ;;  %v3137_v24 = vpop.f32.mrb[47].mxu0  ;;  %v3142_v25 = vpop.f32.mrb[41].mxu1  ;;  %v1552_v26 = vsel %vm142_vm2, %v1550_v20, -inf }
0x1257   :  { %v1547_v27 = vpop.f32.mrb[42].mxu1  ;;  %1553 = vmax.xlane.f32.xlu1 %v1552_v26 }
0x1258   :  { %v3143_v28 = vpop.f32.mrb[43].mxu1  ;;  %v1555_v29 = vsel %vm142_vm2, %v1551_v23, -inf }
0x1259   :  { %1556 = vmax.xlane.f32.xlu0 %v1555_v29 }
0x1268   :  { %1576 = vrot.lane.b32.xlu1 %v3829_v9, %s3439_s23 }
0x12e4   :  { %v1554_v30 = vpop.xlane.xlu1 %1553 }
0x12e5   :  { %v1558_v31 = vsub.f32 %v1550_v20, %v1554_v30 }
0x12e6   :  { %v1557_v32 = vpop.xlane.xlu0 %1556 }
0x12e7   :  { %v1560_v33 = vmul.f32 1.442695, %v1558_v31  ;;  %v1559_v34 = vsub.f32 %v1551_v23, %v1557_v32 }
0x12e8   :  { %v1577_v35 = vpop.permute.xlu1 %1576 }
0x12e9   :  { %3345 = vpow2.f32 %v1560_v33  ;;  %v1562_v36 = vmul.f32 1.442695, %v1559_v34  ;;  %v1582_v37 = vsel %vm269_vm3, %v1577_v35, 0 }
0x12ea   :  { %3145 = vmatpush3.bf16.msra.mxu0 %v1582_v37 }
0x12eb   :  { %3347 = vpow2.f32 %v1562_v36  ;;  %3156 = vmatprep.subr.bf16.mxu0 %v3436_v0 }
0x12f3   :  { %v3346_v38 = vpop.eup %3345 }
0x12f4   :  { %v1564_v39 = vsel %vm142_vm2, %v3346_v38, 0.0 }
0x12f5   :  { %v3348_v40 = vpop.eup %3347  ;;  %1565 = vadd.xlane.f32.xlu1 %v1564_v39 }
0x12f6   :  { %v1567_v41 = vsel %vm142_vm2, %v3348_v40, 0.0 }
0x12f7   :  { %1568 = vadd.xlane.f32.xlu0 %v1567_v41 }
0x1306   :  { %1676 = vrot.lane.b32.xlu1 %v3829_v9, %s3440_s24 }
0x130a   :  { %1726 = vrot.lane.b32.xlu1 %v3831_v13, %s3440_s24  ;;  %s4118_s24 = smov 8  }
0x130d   :  { %1624 = vrot.lane.b32.xlu0 %v3831_v13, %s3439_s23  ;;  %s4117_s23 = smov 40  }
0x130e   :  { %1724 = vrot.lane.b32.xlu1 %v3831_v13, %s3441_s25 }
0x1311   :  { %1674 = vrot.lane.b32.xlu0 %v3829_v9, %s3441_s25  ;;  %s4119_s25 = smov 16  }
0x1382   :  { %v1566_v42 = vpop.xlane.xlu1 %1565 }
0x1383   :  { %3349 = vrcp.f32 %v1566_v42 }
0x1384   :  { %v1569_v43 = vpop.xlane.xlu0 %1568 }
0x1385   :  { %3351 = vrcp.f32 %v1569_v43 }
0x1386   :  { %v1677_v46 = vpop.permute.xlu1 %1676 }
0x1387   :  { %v1682_v55 = vsel %vm142_vm2, %v1677_v46, 0 }
0x1388   :  { %v1625_v44 = vpop.permute.xlu0 %1624 }
0x1389   :  { %v1630_v45 = vsel %vm269_vm3, %v1625_v44, 0 }
0x138a   :  { %3151 = vmatpush3.bf16.msra.mxu1 %v1630_v45  ;;  %v1727_v54 = vpop.permute.xlu1 %1726 }
0x138b   :  { %3162 = vmatprep.subr.bf16.mxu1 %v3436_v0  ;;  %v1732_v57 = vsel %vm142_vm2, %v1727_v54, 0 }
0x138c   :  { %v1675_v58 = vpop.permute.xlu0 %1674 }
0x138d   :  { %v3350_v47 = vpop.eup %3349 }
0x138e   :  { %v1571_v49 = vmul.f32 %v3350_v47, %v3346_v38  ;;  %v1725_v3 = vpop.permute.xlu1 %1724 }
0x138f   :  { %v3352_v50 = vpop.eup %3351 }
0x1390   :  { %v1573_v51 = vmul.f32 %v3352_v50, %v3348_v40  ;;  %v1574_v53 = vpack.c.bf16 %v1571_v49, %v1571_v49 }
0x1392   :  { %3147 = vmatmul.mubr.msk.bf16.vlgmr.msra.gmra.mrb[48].mxu0 %vm142_vm2, %v1574_v53  ;;  %v1575_v56 = vpack.c.bf16 %v1573_v51, %v1573_v51 }
0x1393   :  { %3157 = vmatpush3.bf16.xpose.msra.mxu0 %v1682_v55  ;;  %3158 = vmatprep.mubr.msk.bf16.mxu0 %vm3437_vm0, %v3436_v0 }
0x1394   :  { %3153 = vmatmul.mubr.msk.bf16.vlgmr.msra.gmra.mrb[44].mxu1 %vm142_vm2, %v1575_v56  ;;  %3168 = vmatprep.subr.bf16.mxu0 %v3436_v0 }
0x1395   :  { %3163 = vmatpush3.bf16.xpose.msra.mxu1 %v1732_v57  ;;  %3164 = vmatprep.mubr.msk.bf16.mxu1 %vm3437_vm0, %v3436_v0 }
0x1396   :  { %3174 = vmatprep.subr.bf16.mxu1 %v3436_v0 }
0x139a   :  { %3159 = vmatmul.mubr.msk.bf16.vlgmr.msra.gmra.mrb[52].mxu0 %vm142_vm2, %v1675_v58 }
0x139b   :  { %3170 = vmatprep.mubr.msk.bf16.mxu0 %vm3437_vm0, %v3436_v0 }
0x139c   :  { %3165 = vmatmul.mubr.msk.bf16.vlgmr.msra.gmra.mrb[48].mxu1 %vm142_vm2, %v1725_v3 }
0x139d   :  { %3176 = vmatprep.mubr.msk.bf16.mxu1 %vm3437_vm0, %v3436_v0 }
0x1465   :  { %v1618_v4 = vpop.f32.mrb[48].mxu0 }
0x1466   :  { %1672 = vst.msk [vmem:[#allocation2] sm:$0xff] %vm142_vm2, %v1618_v4  ;;  %v3148_v59 = vpop.f32.mrb[49].mxu0 }
0x1467   :  { %v1621_v60 = vpop.f32.mrb[50].mxu0  ;;  %v1666_v61 = vpop.f32.mrb[44].mxu1 }
0x1468   :  { %1673 = vst.msk [vmem:[#allocation2 + $0x8] sm:$0xff] %vm142_vm2, %v1666_v61  ;;  %v3149_v62 = vpop.f32.mrb[51].mxu0  ;;  %v3154_v63 = vpop.f32.mrb[45].mxu1 }
0x1469   :  { %v1669_v1 = vpop.f32.mrb[46].mxu1 }
0x146a   :  { %v3155_v48 = vpop.f32.mrb[47].mxu1 }
0x146d   :  { %v1718_v52 = vpop.f32.mrb[52].mxu0 }
0x146e   :  { %v1774_v5 = vmul.f32 0.35355338, %v1718_v52  ;;  %v3160_v6 = vpop.f32.mrb[53].mxu0 }
0x146f   :  { %v1721_v7 = vpop.f32.mrb[54].mxu0  ;;  %v1768_v8 = vpop.f32.mrb[48].mxu1 }
0x1470   :  { %v1775_v10 = vmul.f32 0.35355338, %v1768_v8  ;;  %v3161_v12 = vpop.f32.mrb[55].mxu0  ;;  %v3166_v15 = vpop.f32.mrb[49].mxu1  ;;  %v1776_v16 = vsel %vm142_vm2, %v1774_v5, -inf }
0x1471   :  { %v1771_v17 = vpop.f32.mrb[50].mxu1  ;;  %1777 = vmax.xlane.f32.xlu0 %v1776_v16 }
0x1472   :  { %v3167_v18 = vpop.f32.mrb[51].mxu1  ;;  %v1779_v19 = vsel %vm142_vm2, %v1775_v10, -inf }
0x1473   :  { %1780 = vmax.xlane.f32.xlu1 %v1779_v19 }
0x1484   :  { %1800 = vrot.lane.b32.xlu1 %v3829_v9, %s3442_s26 }
0x1488   :  { %1908 = vrot.lane.b32.xlu1 %v3829_v9, %s3443_s27 }
0x148c   :  { %1958 = vrot.lane.b32.xlu1 %v3831_v13, %s3443_s27 }
0x1490   :  { %1956 = vrot.lane.b32.xlu1 %v3831_v13, %s3444_s28 }
0x14fe   :  { %v1778_v20 = vpop.xlane.xlu0 %1777 }
0x14ff   :  { %v1782_v14 = vsub.f32 %v1774_v5, %v1778_v20 }
0x1500   :  { %v1781_v21 = vpop.xlane.xlu1 %1780 }
0x1501   :  { %v1784_v22 = vmul.f32 1.442695, %v1782_v14  ;;  %v1783_v23 = vsub.f32 %v1775_v10, %v1781_v21 }
0x1503   :  { %3353 = vpow2.f32 %v1784_v22  ;;  %v1786_v24 = vmul.f32 1.442695, %v1783_v23 }
0x1504   :  { %v1801_v25 = vpop.permute.xlu1 %1800 }
0x1505   :  { %3355 = vpow2.f32 %v1786_v24  ;;  %v1806_v26 = vsel %vm269_vm3, %v1801_v25, 0 }
0x1506   :  { %3169 = vmatpush3.bf16.msra.mxu0 %v1806_v26 }
0x1507   :  { %3180 = vmatprep.subr.bf16.mxu0 %v3436_v0 }
0x1508   :  { %v1909_v36 = vpop.permute.xlu1 %1908 }
0x1509   :  { %v1914_v40 = vsel %vm142_vm2, %v1909_v36, 0 }
0x150c   :  { %v1959_v42 = vpop.permute.xlu1 %1958 }
0x150d   :  { %v3354_v27 = vpop.eup %3353  ;;  %v1964_v44 = vsel %vm142_vm2, %v1959_v42, 0 }
0x150e   :  { %v1788_v28 = vsel %vm142_vm2, %v3354_v27, 0.0 }
0x150f   :  { %v3356_v29 = vpop.eup %3355  ;;  %1789 = vadd.xlane.f32.xlu0 %v1788_v28 }
0x1510   :  { %v1791_v30 = vsel %vm142_vm2, %v3356_v29, 0.0  ;;  %v1957_v46 = vpop.permute.xlu1 %1956 }
0x1513   :  { %1792 = vadd.xlane.f32.xlu0 %v1791_v30 }
0x1529   :  { %1848 = vrot.lane.b32.xlu0 %v3831_v13, %s3442_s26 }
0x152d   :  { %1906 = vrot.lane.b32.xlu0 %v3829_v9, %s3444_s28 }
0x159c   :  { %v1790_v31 = vpop.xlane.xlu0 %1789 }
0x159d   :  { %3357 = vrcp.f32 %v1790_v31 }
0x15a0   :  { %v1793_v32 = vpop.xlane.xlu0 %1792 }
0x15a1   :  { %3359 = vrcp.f32 %v1793_v32 }
0x15a4   :  { %v1849_v33 = vpop.permute.xlu0 %1848 }
0x15a5   :  { %v1854_v34 = vsel %vm269_vm3, %v1849_v33, 0 }
0x15a6   :  { %3175 = vmatpush3.bf16.msra.mxu1 %v1854_v34 }
0x15a7   :  { %v3358_v35 = vpop.eup %3357  ;;  %3186 = vmatprep.subr.bf16.mxu1 %v3436_v0 }
0x15a8   :  { %v1795_v37 = vmul.f32 %v3358_v35, %v3354_v27  ;;  %v1907_v45 = vpop.permute.xlu0 %1906 }
0x15aa   :  { %v1798_v38 = vpack.c.bf16 %v1795_v37, %v1795_v37 }
0x15ab   :  { %v3360_v39 = vpop.eup %3359 }
0x15ac   :  { %v1797_v41 = vmul.f32 %v3360_v39, %v3356_v29  ;;  %3171 = vmatmul.mubr.msk.bf16.vlgmr.msra.gmra.mrb[56].mxu0 %vm142_vm2, %v1798_v38 }
0x15ad   :  { %3181 = vmatpush3.bf16.xpose.msra.mxu0 %v1914_v40  ;;  %3182 = vmatprep.mubr.msk.bf16.mxu0 %vm3437_vm0, %v3436_v0 }
0x15ae   :  { %v1799_v43 = vpack.c.bf16 %v1797_v41, %v1797_v41  ;;  %3192 = vmatprep.subr.bf16.mxu0 %v3436_v0 }
0x15b0   :  { %3177 = vmatmul.mubr.msk.bf16.vlgmr.msra.gmra.mrb[52].mxu1 %vm142_vm2, %v1799_v43 }
0x15b1   :  { %3187 = vmatpush3.bf16.xpose.msra.mxu1 %v1964_v44  ;;  %3188 = vmatprep.mubr.msk.bf16.mxu1 %vm3437_vm0, %v3436_v0 }
0x15b2   :  { %3198 = vmatprep.subr.bf16.mxu1 %v3436_v0 }
0x15b4   :  { %3183 = vmatmul.mubr.msk.bf16.vlgmr.msra.gmra.mrb[60].mxu0 %vm142_vm2, %v1907_v45 }
0x15b5   :  { %3194 = vmatprep.mubr.msk.bf16.mxu0 %vm3437_vm0, %v3436_v0 }
0x15b8   :  { %3189 = vmatmul.mubr.msk.bf16.vlgmr.msra.gmra.mrb[56].mxu1 %vm142_vm2, %v1957_v46 }
0x15b9   :  { %3200 = vmatprep.mubr.msk.bf16.mxu1 %vm3437_vm0, %v3436_v0 }
0x167f   :  { %v3923_v47 = vpop.f32.mrb[56].mxu0 }
0x1680   :  { %v3172_v49 = vpop.f32.mrb[57].mxu0 }
0x1681   :  { %v1845_v50 = vpop.f32.mrb[58].mxu0 }
0x1682   :  { %v3173_v51 = vpop.f32.mrb[59].mxu0 }
0x1683   :  { %v3925_v53 = vpop.f32.mrb[52].mxu1 }
0x1684   :  { %v3178_v54 = vpop.f32.mrb[53].mxu1 }
0x1685   :  { %v1893_v55 = vpop.f32.mrb[54].mxu1 }
0x1686   :  { %v3179_v56 = vpop.f32.mrb[55].mxu1 }
0x1687   :  { %v1950_v57 = vpop.f32.mrb[60].mxu0 }
0x1688   :  { %v2006_v58 = vmul.f32 0.35355338, %v1950_v57  ;;  %v3184_v3 = vpop.f32.mrb[61].mxu0 }
0x1689   :  { %v1953_v4 = vpop.f32.mrb[62].mxu0 }
0x168a   :  { %v3185_v59 = vpop.f32.mrb[63].mxu0  ;;  %v2008_v60 = vsel %vm142_vm2, %v2006_v58, -inf }
0x168b   :  { %v2000_v61 = vpop.f32.mrb[56].mxu1  ;;  %2009 = vmax.xlane.f32.xlu0 %v2008_v60 }
0x168c   :  { %v2007_v62 = vmul.f32 0.35355338, %v2000_v61  ;;  %v3190_v63 = vpop.f32.mrb[57].mxu1 }
0x168d   :  { %v2003_v1 = vpop.f32.mrb[58].mxu1 }
0x168e   :  { %v3191_v48 = vpop.f32.mrb[59].mxu1  ;;  %v2011_v52 = vsel %vm142_vm2, %v2007_v62, -inf }
0x168f   :  { %2012 = vmax.xlane.f32.xlu1 %v2011_v52 }
0x16a0   :  { %2032 = vrot.lane.b32.xlu1 %v3829_v9, %s3445_s30 }
0x16a4   :  { %2140 = vrot.lane.b32.xlu1 %v3829_v9, %s4115_s2 }
0x16a8   :  { %2190 = vrot.lane.b32.xlu1 %v3831_v13, %s4115_s2 }
0x16ac   :  { %2188 = vrot.lane.b32.xlu1 %v3831_v13, %s4116_s22 }
0x1718   :  { %v2010_v5 = vpop.xlane.xlu0 %2009 }
0x1719   :  { %v2014_v6 = vsub.f32 %v2006_v58, %v2010_v5 }
0x171b   :  { %v2016_v7 = vmul.f32 1.442695, %v2014_v6 }
0x171c   :  { %v2013_v8 = vpop.xlane.xlu1 %2012 }
0x171d   :  { %3361 = vpow2.f32 %v2016_v7  ;;  %v2015_v10 = vsub.f32 %v2007_v62, %v2013_v8 }
0x171f   :  { %v2018_v12 = vmul.f32 1.442695, %v2015_v10 }
0x1720   :  { %v2033_v15 = vpop.permute.xlu1 %2032 }
0x1721   :  { %3363 = vpow2.f32 %v2018_v12  ;;  %v2038_v16 = vsel %vm269_vm3, %v2033_v15, 0 }
0x1722   :  { %3193 = vmatpush3.bf16.msra.mxu0 %v2038_v16 }
0x1723   :  { %3204 = vmatprep.subr.bf16.mxu0 %v3436_v0 }
0x1724   :  { %v2141_v25 = vpop.permute.xlu1 %2140 }
0x1725   :  { %v2146_v29 = vsel %vm142_vm2, %v2141_v25, 0 }
0x1727   :  { %v3362_v17 = vpop.eup %3361 }
0x1728   :  { %v2020_v18 = vsel %vm142_vm2, %v3362_v17, 0.0  ;;  %v2191_v31 = vpop.permute.xlu1 %2190 }
0x1729   :  { %2021 = vadd.xlane.f32.xlu0 %v2020_v18  ;;  %v2196_v33 = vsel %vm142_vm2, %v2191_v31, 0 }
0x172b   :  { %v3364_v19 = vpop.eup %3363 }
0x172c   :  { %v2023_v20 = vsel %vm142_vm2, %v3364_v19, 0.0  ;;  %v2189_v35 = vpop.permute.xlu1 %2188 }
0x172d   :  { %2024 = vadd.xlane.f32.xlu0 %v2023_v20 }
0x1743   :  { %2080 = vrot.lane.b32.xlu0 %v3831_v13, %s3445_s30 }
0x1747   :  { %2138 = vrot.lane.b32.xlu0 %v3829_v9, %s4116_s22 }
0x17b6   :  { %v2022_v14 = vpop.xlane.xlu0 %2021 }
0x17b7   :  { %3365 = vrcp.f32 %v2022_v14 }
0x17ba   :  { %v2025_v21 = vpop.xlane.xlu0 %2024 }
0x17bb   :  { %3367 = vrcp.f32 %v2025_v21  ;;  %v3295_v21 = vld [vmem:[%s4090_s3 + $0x10] sm:$0xff]  }
0x17be   :  { %v2081_v22 = vpop.permute.xlu0 %2080 }
0x17bf   :  { %v2086_v23 = vsel %vm269_vm3, %v2081_v22, 0  ;;  %v3296_v22 = vld [vmem:[%s4090_s3 + $0x18] sm:$0xff]  }
0x17c0   :  { %3199 = vmatpush3.bf16.msra.mxu1 %v2086_v23 }
0x17c1   :  { %v3366_v24 = vpop.eup %3365  ;;  %3210 = vmatprep.subr.bf16.mxu1 %v3436_v0 }
0x17c2   :  { %v2027_v26 = vmul.f32 %v3366_v24, %v3362_v17  ;;  %v2139_v34 = vpop.permute.xlu0 %2138 }
0x17c4   :  { %v2030_v27 = vpack.c.bf16 %v2027_v26, %v2027_v26 }
0x17c5   :  { %v3368_v28 = vpop.eup %3367 }
0x17c6   :  { %v2029_v30 = vmul.f32 %v3368_v28, %v3364_v19  ;;  %3195 = vmatmul.mubr.msk.bf16.vlgmr.msra.gmra.mrb[64].mxu0 %vm142_vm2, %v2030_v27 }
0x17c7   :  { %3205 = vmatpush3.bf16.xpose.msra.mxu0 %v2146_v29  ;;  %3206 = vmatprep.mubr.msk.bf16.mxu0 %vm3437_vm0, %v3436_v0 }
0x17c8   :  { %v2031_v32 = vpack.c.bf16 %v2029_v30, %v2029_v30  ;;  %3216 = vmatprep.subr.bf16.mxu0 %v3436_v0 }
0x17ca   :  { %3201 = vmatmul.mubr.msk.bf16.vlgmr.msra.gmra.mrb[60].mxu1 %vm142_vm2, %v2031_v32 }
0x17cb   :  { %3211 = vmatpush3.bf16.xpose.msra.mxu1 %v2196_v33  ;;  %3212 = vmatprep.mubr.msk.bf16.mxu1 %vm3437_vm0, %v3436_v0 }
0x17cc   :  { %3222 = vmatprep.subr.bf16.mxu1 %v3436_v0 }
0x17ce   :  { %3207 = vmatmul.mubr.msk.bf16.vlgmr.msra.gmra.mrb[68].mxu0 %vm142_vm2, %v2139_v34 }
0x17cf   :  { %3218 = vmatprep.mubr.msk.bf16.mxu0 %vm3437_vm0, %v3436_v0 }
0x17d2   :  { %3213 = vmatmul.mubr.msk.bf16.vlgmr.msra.gmra.mrb[64].mxu1 %vm142_vm2, %v2189_v35 }
0x17d3   :  { %3224 = vmatprep.mubr.msk.bf16.mxu1 %vm3437_vm0, %v3436_v0 }
0x1899   :  { %v2074_v36 = vpop.f32.mrb[64].mxu0 }
0x189a   :  { %v3196_v37 = vpop.f32.mrb[65].mxu0 }
0x189b   :  { %v2077_v38 = vpop.f32.mrb[66].mxu0 }
0x189c   :  { %v3197_v39 = vpop.f32.mrb[67].mxu0 }
0x189d   :  { %v2122_v40 = vpop.f32.mrb[60].mxu1 }
0x189e   :  { %v3202_v41 = vpop.f32.mrb[61].mxu1 }
0x189f   :  { %v2125_v42 = vpop.f32.mrb[62].mxu1 }
0x18a0   :  { %v3203_v43 = vpop.f32.mrb[63].mxu1 }
0x18a1   :  { %v2182_v44 = vpop.f32.mrb[68].mxu0 }
0x18a2   :  { %v2238_v45 = vmul.f32 0.35355338, %v2182_v44  ;;  %v3208_v46 = vpop.f32.mrb[69].mxu0 }
0x18a3   :  { %v2185_v49 = vpop.f32.mrb[70].mxu0 }
0x18a4   :  { %v3209_v50 = vpop.f32.mrb[71].mxu0  ;;  %v2240_v51 = vsel %vm142_vm2, %v2238_v45, -inf }
0x18a5   :  { %v2232_v54 = vpop.f32.mrb[64].mxu1  ;;  %2241 = vmax.xlane.f32.xlu0 %v2240_v51 }
0x18a6   :  { %v2239_v55 = vmul.f32 0.35355338, %v2232_v54  ;;  %v3214_v56 = vpop.f32.mrb[65].mxu1 }
0x18a7   :  { %v2235_v57 = vpop.f32.mrb[66].mxu1 }
0x18a8   :  { %v3215_v58 = vpop.f32.mrb[67].mxu1  ;;  %v2243_v3 = vsel %vm142_vm2, %v2239_v55, -inf }
0x18a9   :  { %2244 = vmax.xlane.f32.xlu1 %v2243_v3 }
0x18ba   :  { %2264 = vrot.lane.b32.xlu1 %v3829_v9, %s4117_s23 }
0x18be   :  { %1898 = vrot.lane.b32.xlu1 %v3923_v47, %s4118_s24 }
0x18c2   :  { %1900 = vrot.lane.b32.xlu1 %v3925_v53, %s4118_s24 }
0x18c6   :  { %2132 = vrot.lane.b32.xlu1 %v2122_v40, %s4119_s25 }
0x1932   :  { %v2242_v4 = vpop.xlane.xlu0 %2241 }
0x1933   :  { %v2246_v59 = vsub.f32 %v2238_v45, %v2242_v4  ;;  %v3298_v4 = vld [vmem:[%s4092_s5 + $0x18] sm:$0xff]  }
0x1935   :  { %v2248_v60 = vmul.f32 1.442695, %v2246_v59  ;;  %v3299_v59 = vld [vmem:[%s4094_s7 + $0x20] sm:$0xff]  }
0x1936   :  { %v2245_v61 = vpop.xlane.xlu1 %2244 }
0x1937   :  { %3369 = vpow2.f32 %v2248_v60  ;;  %v2247_v62 = vsub.f32 %v2239_v55, %v2245_v61  ;;  %v3300_v60 = vld [vmem:[%s4094_s7 + $0x28] sm:$0xff]  }
0x1939   :  { %v2250_v63 = vmul.f32 1.442695, %v2247_v62 }
0x193a   :  { %v2265_v1 = vpop.permute.xlu1 %2264 }
0x193b   :  { %3371 = vpow2.f32 %v2250_v63  ;;  %v2270_v48 = vsel %vm269_vm3, %v2265_v1, 0 }
0x193c   :  { %3217 = vmatpush3.bf16.msra.mxu0 %v2270_v48 }
0x193d   :  { %3228 = vmatprep.subr.bf16.mxu0 %v3436_v0 }
0x193e   :  { %v1899_v9 = vpop.permute.xlu1 %1898 }
0x193f   :  { %1904 = vst.msk [vmem:[#allocation2] sm:$0xff] %vm593_vm4, %v1899_v9 }
0x1941   :  { %v3370_v47 = vpop.eup %3369 }
0x1942   :  { %v1901_v53 = vpop.permute.xlu1 %1900  ;;  %v2252_v52 = vsel %vm142_vm2, %v3370_v47, 0.0 }
0x1943   :  { %1905 = vst.msk [vmem:[#allocation2 + $0x8] sm:$0xff] %vm593_vm4, %v1901_v53  ;;  %2253 = vadd.xlane.f32.xlu0 %v2252_v52  ;;  %v2863_v52 = vld [vmem:[%s4096_s9 + $0x1] ss:$0 sm:$0xff] }
0x1945   :  { %v3372_v5 = vpop.eup %3371 }
0x1946   :  { %v2133_v6 = vpop.permute.xlu1 %2132  ;;  %v2255_v7 = vsel %vm142_vm2, %v3372_v5, 0.0 }
0x1947   :  { %2137 = vst.msk [vmem:[#allocation2 + $0x8] sm:$0xff] %vm826_vm5, %v2133_v6  ;;  %2256 = vadd.xlane.f32.xlu0 %v2255_v7 }
0x195d   :  { %2312 = vrot.lane.b32.xlu0 %v3831_v13, %s4117_s23 }
0x1961   :  { %2130 = vrot.lane.b32.xlu0 %v2074_v36, %s4119_s25  ;;  %v2857_v36 = vld [vmem:[%s4091_s4 + $0x1] ss:$0 sm:$0xff] }
0x19d0   :  { %v2254_v8 = vpop.xlane.xlu0 %2253 }
0x19d1   :  { %3373 = vrcp.f32 %v2254_v8  ;;  %v2864_v8 = vld [vmem:[%s4097_s10 + $0x1] ss:$0 sm:$0xff] }
0x19d4   :  { %v2257_v10 = vpop.xlane.xlu0 %2256 }
0x19d5   :  { %3375 = vrcp.f32 %v2257_v10 }
0x19d8   :  { %v2313_v12 = vpop.permute.xlu0 %2312 }
0x19d9   :  { %v2318_v15 = vsel %vm269_vm3, %v2313_v12, 0 }
0x19da   :  { %3223 = vmatpush3.bf16.msra.mxu1 %v2318_v15 }
0x19db   :  { %v3374_v16 = vpop.eup %3373  ;;  %3236 = vmatprep.subr.bf16.mxu1 %v3436_v0 }
0x19dc   :  { %v2259_v17 = vmul.f32 %v3374_v16, %v3370_v47  ;;  %v2131_v18 = vpop.permute.xlu0 %2130 }
0x19dd   :  { %2136 = vst.msk [vmem:[#allocation2] sm:$0xff] %vm826_vm5, %v2131_v18  ;;  %v3302_v18 = vld [vmem:[%s4094_s7 + $0x38] sm:$0xff]  }
0x19de   :  { %v2262_v19 = vpack.c.bf16 %v2259_v17, %v2259_v17  ;;  %v3301_v17 = vld [vmem:[%s4094_s7 + $0x30] sm:$0xff]  }
0x19df   :  { %v3376_v20 = vpop.eup %3375 }
0x19e0   :  { %v2261_v13 = vmul.f32 %v3376_v20, %v3372_v5  ;;  %3219 = vmatmul.mubr.msk.bf16.vlgmr.msra.gmra.mrb[72].mxu0 %vm142_vm2, %v2262_v19  ;;  %v2870_v19 = vld [vmem:[%s4093_s6 + $0x1] ss:$0 sm:$0xff] }
0x19e1   :  { %3232 = vmatprep.mubr.msk.bf16.mxu0 %vm3437_vm0, %v3436_v0  ;;  %3229 = vmatpush3.bf16.msra.mxu0 %v3295_v21 }
0x19e2   :  { %v2263_v14 = vpack.c.bf16 %v2261_v13, %v2261_v13  ;;  %3230 = vmatprep.subr.bf16.mxu0 %v3436_v0 }
0x19e4   :  { %3225 = vmatmul.mubr.msk.bf16.vlgmr.msra.gmra.mrb[68].mxu1 %vm142_vm2, %v2263_v14 }
0x19e5   :  { %3240 = vmatprep.mubr.msk.bf16.mxu1 %vm3437_vm0, %v3436_v0  ;;  %3231 = vmatpush3.bf16.msra.mxu0 %v3296_v22 }
0x19e6   :  { %3244 = vmatprep.subr.bf16.mxu0 %v3436_v0 }
0x1ab3   :  { %v2306_v23 = vpop.f32.mrb[72].mxu0 }
0x1ab4   :  { %2362 = vrot.lane.b32.xlu0 %v2306_v23, %s4120_s21  ;;  %v3220_v24 = vpop.f32.mrb[73].mxu0 }
0x1ab5   :  { %v2309_v25 = vpop.f32.mrb[74].mxu0 }
0x1ab6   :  { %v3221_v26 = vpop.f32.mrb[75].mxu0 }
0x1ab7   :  { %v2354_v27 = vpop.f32.mrb[68].mxu1 }
0x1ab8   :  { %2364 = vrot.lane.b32.xlu1 %v2354_v27, %s4120_s21  ;;  %v3226_v28 = vpop.f32.mrb[69].mxu1  ;;  %v2883_v27 = vld [vmem:[%s4095_s8 + $0x1] ss:$0 sm:$0xff] }
0x1ab9   :  { %v2357_v29 = vpop.f32.mrb[70].mxu1 }
0x1aba   :  { %v3227_v30 = vpop.f32.mrb[71].mxu1 }
0x1b26   :  { %v2363_v31 = vpop.permute.xlu0 %2362 }
0x1b27   :  { %2368 = vst.msk [vmem:[#allocation2] sm:$0xff] %vm1059_vm6, %v2363_v31 }
0x1b2a   :  { %v2365_v32 = vpop.permute.xlu1 %2364 }
0x1b2b   :  { %2369 = vst.msk [vmem:[#allocation2 + $0x8] sm:$0xff] %vm1059_vm6, %v2365_v32 }
0x1b2e   :  { %v2370_v33 = vld [vmem:[#allocation2] sm:$0xff] }
0x1b32   :  { %v2371_v34 = vld [vmem:[#allocation2 + $0x8] sm:$0xff] }
0x1b33   :  { %v2372_v35 = vpack.c.bf16 %v2371_v34, %v2370_v33 }
0x1b35   :  { %3233 = vmatmul.mubr.msk.bf16.vlgmr.msra.gmra.mrb[76].mxu0 %vm92_vm1, %v2372_v35 }
0x1b36   :  { %3252 = vmatprep.mubr.msk.bf16.mxu0 %vm3437_vm0, %v3436_v0  ;;  %3245 = vmatpush3.bf16.msra.mxu0 %v3299_v59 }
0x1b37   :  { %3246 = vmatprep.subr.bf16.mxu0 %v3436_v0 }
0x1b3a   :  { %3247 = vmatpush3.bf16.msra.mxu0 %v3300_v60 }
0x1b3b   :  { %3248 = vmatprep.subr.bf16.mxu0 %v3436_v0 }
0x1b3e   :  { %3249 = vmatpush3.bf16.msra.mxu0 %v3301_v17 }
0x1b3f   :  { %3250 = vmatprep.subr.bf16.mxu0 %v3436_v0 }
0x1b42   :  { %3251 = vmatpush3.bf16.msra.mxu0 %v3302_v18 }
0x1c08   :  { %v2435_v37 = vpop.f32.mrb[76].mxu0 }
0x1c09   :  { %v2436_v38 = vadd.f32 %v2857_v36, %v2435_v37  ;;  %v3234_v39 = vpop.f32.mrb[77].mxu0 }
0x1c0a   :  { %v2438_v40 = vpop.f32.mrb[78].mxu0 }
0x1c0b   :  { %v2439_v41 = vadd.f32 %v2857_v36, %v2438_v40  ;;  %v3235_v42 = vpop.f32.mrb[79].mxu0  ;;  %v2442_v43 = vadd.f32 %v2436_v38, %v3817_v2 }
0x1c0d   :  { %v2443_v44 = vadd.f32 %v2439_v41, %v3819_v11  ;;  %v2448_v45 = vsel %vm92_vm1, %v2442_v43, 0.0  ;;  %v3297_v11 = vld [vmem:[%s4092_s5 + $0x10] sm:$0xff]  }
0x1c0e   :  { %2449 = vadd.xlane.f32.xlu0 %v2448_v45  ;;  %3237 = vmatpush3.bf16.msra.mxu1 %v3297_v11  ;;  %v2891_v11 = vld [vmem:[%s4098_s11 + $0x1] ss:$0 sm:$0xff] }
0x1c0f   :  { %v2451_v46 = vsel %vm92_vm1, %v2443_v44, 0.0  ;;  %3238 = vmatprep.subr.bf16.mxu1 %v3436_v0 }
0x1c10   :  { %2452 = vadd.xlane.f32.xlu1 %v2451_v46 }
0x1c12   :  { %3239 = vmatpush3.bf16.msra.mxu1 %v3298_v4 }
0x1c13   :  { %3256 = vmatprep.subr.bf16.mxu1 %v3436_v0 }
0x1c9b   :  { %v2450_v49 = vpop.xlane.xlu0 %2449 }
0x1c9c   :  { %v2454_v50 = vmul.f32 0.03125, %v2450_v49 }
0x1c9d   :  { %v2453_v51 = vpop.xlane.xlu1 %2452 }
0x1c9e   :  { %v2456_v54 = vsub.f32 %v2442_v43, %v2454_v50  ;;  %v2455_v55 = vmul.f32 0.03125, %v2453_v51  ;;  %v3303_v50 = vld [vmem:[%s4100_s13] sm:$0xff]   ;;  %v3304_v51 = vld [vmem:[%s4100_s13 + $0x8] sm:$0xff]  }
0x1ca0   :  { %v2457_v56 = vsub.f32 %v2443_v44, %v2455_v55  ;;  %v2458_v57 = vmul.f32 %v2456_v54, %v2456_v54 }
0x1ca2   :  { %v2460_v58 = vsel %vm92_vm1, %v2458_v57, 0.0  ;;  %v2459_v3 = vmul.f32 %v2457_v56, %v2457_v56 }
0x1ca3   :  { %2461 = vadd.xlane.f32.xlu0 %v2460_v58 }
0x1ca4   :  { %v2463_v2 = vsel %vm92_vm1, %v2459_v3, 0.0 }
0x1ca7   :  { %2464 = vadd.xlane.f32.xlu0 %v2463_v2 }
0x1d30   :  { %v2462_v61 = vpop.xlane.xlu0 %2461 }
0x1d31   :  { %v2466_v62 = vmul.f32 0.03125, %v2462_v61 }
0x1d33   :  { %v2468_v63 = vadd.f32 1e-05, %v2466_v62 }
0x1d34   :  { %v2465_v1 = vpop.xlane.xlu0 %2464 }
0x1d35   :  { %3377 = vrsqrt.f32 %v2468_v63  ;;  %v2467_v48 = vmul.f32 0.03125, %v2465_v1 }
0x1d37   :  { %v2469_v9 = vadd.f32 1e-05, %v2467_v48 }
0x1d39   :  { %3379 = vrsqrt.f32 %v2469_v9 }
0x1d3f   :  { %v3378_v47 = vpop.eup %3377 }
0x1d40   :  { %v2472_v53 = vmul.f32 %v3378_v47, %v2456_v54 }
0x1d42   :  { %v2480_v6 = vmul.f32 %v2863_v52, %v2472_v53 }
0x1d43   :  { %v3380_v5 = vpop.eup %3379 }
0x1d44   :  { %v2473_v7 = vmul.f32 %v3380_v5, %v2457_v56  ;;  %v2488_v12 = vadd.f32 %v2864_v8, %v2480_v6 }
0x1d46   :  { %v2481_v10 = vmul.f32 %v2863_v52, %v2473_v7  ;;  %v2893_v7 = vld [vmem:[%s4101_s14] ss:$0 sm:$0xff] }
0x1d48   :  { %v2489_v15 = vadd.f32 %v2864_v8, %v2481_v10 }
0x1d4a   :  { %v2490_v16 = vpack.c.bf16 %v2489_v15, %v2488_v12 }
0x1d4c   :  { %3241 = vmatmul.mubr.msk.bf16.vlgmr.msra.gmra.mrb[72].mxu1 %vm92_vm1, %v2490_v16 }
0x1d4d   :  { %3260 = vmatprep.mubr.msk.bf16.mxu1 %vm3437_vm0, %v3436_v0  ;;  %3257 = vmatpush3.bf16.msra.mxu1 %v3303_v50 }
0x1d4e   :  { %3258 = vmatprep.subr.bf16.mxu1 %v3436_v0  ;;  %v2892_v0 = vld [vmem:[%s4099_s12 + $0x1] ss:$0 sm:$0xff]  ;;  %s3451_s12 = smov [#allocation6]  }
0x1d4f   :  { %s2780_s29 = sshll.u32 %s3451_s12, 4  ;;  %s2781_s29 = int_to_ptr.vmem [resolvable:$true] %s2780_s29 }
0x1d50   :  { %s3407_s18 = scalar_lea.vmem %s2781_s29, 32  ;;  %p3412_p9 = scmp.lt.s32.totalorder %s2781_s29, %s2781_s29 }
0x1d51   :  { %3259 = vmatpush3.bf16.msra.mxu1 %v3304_v51  ;;  %p3408_p8 = scmp.ne.s32.totalorder %s2781_s29, %s3407_s18  ;;  %p3413_p10 = scmp.lt.s32.totalorder %s3407_s18, %s3407_s18 }
0x1d53   :  { %p3414_p11 = por %p3413_p10, %p3412_p9 }
0x1d55   :  { %p3415_p12 = pnand %p3414_p11, %p3408_p8 }
0x1e1f   :  { %v2553_v20 = vpop.f32.mrb[72].mxu1 }
0x1e20   :  { %v2554_v13 = vadd.f32 %v2870_v19, %v2553_v20  ;;  %v3242_v14 = vpop.f32.mrb[73].mxu1 }
0x1e21   :  { %v2556_v21 = vpop.f32.mrb[74].mxu1 }
0x1e22   :  { %v2557_v22 = vadd.f32 %v2870_v19, %v2556_v21  ;;  %v3243_v23 = vpop.f32.mrb[75].mxu1  ;;  %v2560_v24 = vmax.f32 %v2554_v13, 0.0 }
0x1e24   :  { %v2561_v25 = vmax.f32 %v2557_v22, 0.0 }
0x1e26   :  { %v2562_v26 = vpack.c.bf16 %v2561_v25, %v2560_v24 }
0x1e28   :  { %3253 = vmatmul.mubr.msk.bf16.vlgmr.msra.gmra.mrb[80].mxu0 %vm1289_vm7, %v2562_v26 }
0x1efb   :  { %v2641_v28 = vpop.f32.mrb[80].mxu0 }
0x1efc   :  { %v2642_v29 = vadd.f32 %v2883_v27, %v2641_v28  ;;  %v3254_v30 = vpop.f32.mrb[81].mxu0 }
0x1efd   :  { %v2644_v31 = vpop.f32.mrb[82].mxu0 }
0x1efe   :  { %v2645_v32 = vadd.f32 %v2883_v27, %v2644_v31  ;;  %v3255_v33 = vpop.f32.mrb[83].mxu0  ;;  %v2648_v34 = vadd.f32 %v2642_v29, %v2488_v12 }
0x1f00   :  { %v2649_v35 = vadd.f32 %v2645_v32, %v2489_v15  ;;  %v2654_v36 = vsel %vm92_vm1, %v2648_v34, 0.0 }
0x1f01   :  { %2655 = vadd.xlane.f32.xlu0 %v2654_v36 }
0x1f02   :  { %v2657_v37 = vsel %vm92_vm1, %v2649_v35, 0.0 }
0x1f03   :  { %2658 = vadd.xlane.f32.xlu1 %v2657_v37 }
0x1f8e   :  { %v2656_v38 = vpop.xlane.xlu0 %2655 }
0x1f8f   :  { %v2660_v39 = vmul.f32 0.03125, %v2656_v38 }
0x1f90   :  { %v2659_v40 = vpop.xlane.xlu1 %2658 }
0x1f91   :  { %v2662_v41 = vsub.f32 %v2648_v34, %v2660_v39  ;;  %v2661_v42 = vmul.f32 0.03125, %v2659_v40 }
0x1f93   :  { %v2663_v43 = vsub.f32 %v2649_v35, %v2661_v42  ;;  %v2664_v44 = vmul.f32 %v2662_v41, %v2662_v41 }
0x1f95   :  { %v2666_v45 = vsel %vm92_vm1, %v2664_v44, 0.0  ;;  %v2665_v46 = vmul.f32 %v2663_v43, %v2663_v43 }
0x1f96   :  { %2667 = vadd.xlane.f32.xlu0 %v2666_v45 }
0x1f97   :  { %v2669_v49 = vsel %vm92_vm1, %v2665_v46, 0.0 }
0x1f98   :  { %2670 = vadd.xlane.f32.xlu1 %v2669_v49 }
0x2023   :  { %v2668_v54 = vpop.xlane.xlu0 %2667 }
0x2024   :  { %v2672_v55 = vmul.f32 0.03125, %v2668_v54 }
0x2025   :  { %v2671_v56 = vpop.xlane.xlu1 %2670 }
0x2026   :  { %v2674_v57 = vadd.f32 1e-05, %v2672_v55  ;;  %v2673_v58 = vmul.f32 0.03125, %v2671_v56 }
0x2028   :  { %3381 = vrsqrt.f32 %v2674_v57  ;;  %v2675_v3 = vadd.f32 1e-05, %v2673_v58 }
0x202a   :  { %3383 = vrsqrt.f32 %v2675_v3 }
0x2032   :  { %v3382_v2 = vpop.eup %3381 }
0x2033   :  { %v2678_v4 = vmul.f32 %v3382_v2, %v2662_v41 }
0x2034   :  { %v3384_v59 = vpop.eup %3383 }
0x2035   :  { %v2686_v60 = vmul.f32 %v2891_v11, %v2678_v4  ;;  %v2679_v61 = vmul.f32 %v3384_v59, %v2663_v43 }
0x2037   :  { %v2694_v62 = vadd.f32 %v2892_v0, %v2686_v60  ;;  %v2687_v63 = vmul.f32 %v2891_v11, %v2679_v61 }
0x2039   :  { %v2695_v1 = vadd.f32 %v2892_v0, %v2687_v63  ;;  %v2696_v48 = vpack.c.bf16 %v2694_v62, %v2694_v62 }
0x203b   :  { %v2697_v9 = vpack.c.bf16 %v2695_v1, %v2695_v1  ;;  %v2711_v53 = vunpack.c.l.b16 %v2696_v48 }
0x203d   :  { %v2712_v47 = vunpack.c.l.b16 %v2697_v9 }
0x203f   :  { %v2713_v52 = vrot.slane %v2712_v47, 7 }
0x2041   :  { %v2715_v5 = vsel %vm2714_vm8, %v2713_v52, %v2711_v53 }
0x2042   :  { %v2716_v6 = vpack.c.b16 %v2715_v5, %v2715_v5 }
0x2044   :  { %3261 = vmatmul.mubr.msk.bf16.vlgmr.msra.gmra.mrb[76].mxu1 %vm92_vm1, %v2716_v6 }
0x2117   :  { %v2766_v8 = vpop.f32.mrb[76].mxu1 }
0x2118   :  { %v2767_v10 = vadd.f32 %v2893_v7, %v2766_v8  ;;  %v3262_v12 = vpop.f32.mrb[77].mxu1 }
0x2119   :  { %v2769_v15 = vpop.f32.mrb[78].mxu1 }
0x211a   :  { %v3263_v16 = vpop.f32.mrb[79].mxu1  ;;  %2773 = vst.msk [vmem:[#allocation6] sm:$0x3] %vm2772_vm9, %v2767_v10 }
0x211b   :  { %3418 = shalt.err (!%p3415_p12)
}
0x211c   :  { %s3419_s14 = scalar_lea.hbm %s4102_s15, 32 }
0x211d   :  { %p3420_p13 = scmp.ne.s32.totalorder %s4102_s15, %s3419_s14  ;;  %p3423_p0 = scmp.lt.u32.totalorder %s3419_s14, %s4102_s15 }
0x211f   :  { %p3425_p1 = pnand %p3423_p0, %p3420_p13 }
0x2121   :  { %3428 = shalt.err (!%p3425_p1)
}
0x2122   :  { %2783 = dma.vmem_to_hbm [thread:$0]  %s2781_s29, 32, %s4102_s15, [#allocation5]  }
0x2123   :  { %3431 = dma.done.wait [#allocation5], 32  }
0x2124   :  { %3432 = vsyncadd [#allocation5], 4294967264 }
0x2125   :  { %2787 = vsyncpa [#allocation4], 1 }
0x2126   :  { %2788 = vsyncpa [#allocation5], 1 }

</bundles_post_ra>
